<compile_context>
chip_gen: v7x
topology: tpu7x:2x2x1
jax: 0.10.0
libtpu: 0.0.40
codegen_flags: <defaults>
</compile_context>

<pallas_src>
import functools

import jax
import jax.numpy as jnp
from jax.experimental import pallas as pl
from jax.experimental.pallas import tpu as pltpu

LANE = 128  # TPU vreg lane width


def _round_up(x: int, m: int) -> int:
    return (x + m - 1) // m * m


def _resmlp_kernel(*refs, num_layers: int, compute_dtype):
    """Fused ResMLP forward on one row-tile.

    refs layout: x_ref, w0, b0, w1, b1, ..., w_{L-1}, b_{L-1}, out_ref
    All matmuls run on the MXU in `compute_dtype` with f32 accumulation; the
    bias add / ReLU / residual epilogue stays in f32.
    """
    x_ref = refs[0]
    out_ref = refs[1 + 2 * num_layers]

    def wb(i):
        return refs[1 + 2 * i][...], refs[2 + 2 * i][...]  # (Cin,Cout), (1,Cout)

    # Layer 0: Linear only (ResMLP applies no activation after the first layer).
    w0, b0 = wb(0)
    h = jnp.dot(x_ref[...], w0, preferred_element_type=jnp.float32) + b0

    # Middle layers: Linear -> ReLU -> (+ identity). dropout=0, norm=None.
    for i in range(1, num_layers - 1):
        w, b = wb(i)
        y = jnp.dot(h.astype(compute_dtype), w,
                    preferred_element_type=jnp.float32) + b
        h = jnp.maximum(y, 0.0) + h

    # Last layer: Linear only.
    w_last, b_last = wb(num_layers - 1)
    out = jnp.dot(h.astype(compute_dtype), w_last,
                  preferred_element_type=jnp.float32) + b_last
    out_ref[...] = out.astype(out_ref.dtype)


def resmlp_forward(x, params, *, tile_m: int = 256,
                   compute_dtype=jnp.bfloat16):
    """Run the whole ResMLP as a single fused Pallas kernel.

    x: [N, in_channels] float32.  params: list of (W [Cin,Cout], b [Cout]).
    Channels are zero-padded to multiples of 128 (lane-dense tiles); rows are
    zero-padded to a multiple of tile_m; padding is sliced off at the end.
    """
    n, c_in = x.shape
    num_layers = len(params)

    dims = [c_in] + [w.shape[1] for (w, _) in params]
    dims_pad = [_round_up(d, LANE) for d in dims]

    tile_m = max(8, min(tile_m, _round_up(n, 8)))
    n_pad = _round_up(n, tile_m)

    # --- pad + cast operands (weights resident in VMEM, so pad once here) ---
    x_pad = jnp.zeros((n_pad, dims_pad[0]), compute_dtype)
    x_pad = x_pad.at[:n, :c_in].set(x.astype(compute_dtype))

    operands = [x_pad]
    in_specs = [pl.BlockSpec((tile_m, dims_pad[0]), lambda i: (i, 0))]
    for li, (w, b) in enumerate(params):
        ci, co = w.shape
        ci_p, co_p = dims_pad[li], dims_pad[li + 1]
        w_pad = jnp.zeros((ci_p, co_p), compute_dtype).at[:ci, :co].set(
            w.astype(compute_dtype))
        b_pad = jnp.zeros((1, co_p), jnp.float32).at[0, :co].set(
            b.astype(jnp.float32))
        operands += [w_pad, b_pad]
        # Constant index_map: weight/bias blocks never change -> stay in VMEM.
        in_specs += [
            pl.BlockSpec((ci_p, co_p), lambda i: (0, 0)),
            pl.BlockSpec((1, co_p), lambda i: (0, 0)),
        ]

    c_out_pad = dims_pad[-1]
    grid = (n_pad // tile_m,)

    # Advisory cost estimate for XLA scheduling of the fused custom call.
    flops = 2 * n_pad * sum(dims_pad[i] * dims_pad[i + 1]
                            for i in range(num_layers))
    bytes_accessed = int(
        sum(int(op.size) * op.dtype.itemsize for op in operands)
        + n_pad * c_out_pad * 4)

    kernel = functools.partial(
        _resmlp_kernel, num_layers=num_layers, compute_dtype=compute_dtype)

    out_pad = pl.pallas_call(
        kernel,
        out_shape=jax.ShapeDtypeStruct((n_pad, c_out_pad), jnp.float32),
        grid=grid,
        in_specs=in_specs,
        out_specs=pl.BlockSpec((tile_m, c_out_pad), lambda i: (i, 0)),
        compiler_params=pltpu.CompilerParams(
            dimension_semantics=("parallel",),        # megacore sharding on v7x
            vmem_limit_bytes=32 * 1024 * 1024,        # safely inside v7x 64 MiB
        ),
        cost_estimate=pl.CostEstimate(
            flops=flops, transcendentals=0, bytes_accessed=bytes_accessed),
    )(*operands)

    return out_pad[:n, :dims[-1]].astype(x.dtype)


def init_mlp_params(key, in_channels, hidden_channels, num_layers, out_channels):
    """Deterministic synthetic params mirroring the module's layer shapes.

    lins[0]:      in_channels     -> hidden_channels
    lins[1..L-2]: hidden_channels -> hidden_channels
    lins[L-1]:    hidden_channels -> out_channels
    Weights stored [C_in, C_out] (== PyTorch Linear weight.T).
    """
    dims = [in_channels] + [hidden_channels] * (num_layers - 1) + [out_channels]
    params = []
    for i in range(num_layers):
        key, wk, bk = jax.random.split(key, 3)
        fan_in, fan_out = dims[i], dims[i + 1]
        bound = 1.0 / jnp.sqrt(jnp.float32(fan_in))
        w = jax.random.uniform(wk, (fan_in, fan_out), jnp.float32, -bound, bound)
        b = jax.random.uniform(bk, (fan_out,), jnp.float32, -bound, bound)
        params.append((w, b))
    return params


def resmlp_reference(x, params, compute_dtype=jnp.float32):
    """Pure-JAX ResMLP reference (optionally mirroring the bf16 matmul inputs)."""
    cd = compute_dtype
    w0, b0 = params[0]
    h = jnp.dot(x.astype(cd), w0.astype(cd),
                preferred_element_type=jnp.float32) + b0
    for w, b in params[1:-1]:
        y = jnp.dot(h.astype(cd), w.astype(cd),
                    preferred_element_type=jnp.float32) + b
        h = jnp.maximum(y, 0.0) + h
    w_last, b_last = params[-1]
    return jnp.dot(h.astype(cd), w_last.astype(cd),
                   preferred_element_type=jnp.float32) + b_last


if __name__ == "__main__":
    key = jax.random.PRNGKey(0)
    # Small, module-consistent shapes; N big enough to exercise the row grid.
    N, IN_C, HID_C, OUT_C, NUM_LAYERS = 1024, 16, 32, 8, 4

    kx, kp = jax.random.split(key)
    x = jax.random.normal(kx, (N, IN_C), jnp.float32)
    params = init_mlp_params(kp, IN_C, HID_C, NUM_LAYERS, OUT_C)

    out = resmlp_forward(x, params, tile_m=256)
    out = jax.block_until_ready(out)

    # Tight check against a reference using the same bf16-matmul / f32-epilogue math.
    ref_mixed = resmlp_reference(x, params, compute_dtype=jnp.bfloat16)
    # Loose sanity check against full-f32 semantics (== the PyTorch module).
    ref_f32 = resmlp_reference(x, params, compute_dtype=jnp.float32)

    assert out.shape == (N, OUT_C), out.shape
    assert jnp.allclose(out, ref_mixed, atol=1e-3, rtol=1e-3), \
        "mismatch vs mixed-precision reference"
    assert jnp.allclose(out, ref_f32, atol=1e-1, rtol=1e-1), \
        "mismatch vs f32 reference"

    print("KERNEL_OK")
</pallas_src>

<mosaic_0001>
module attributes {stable_mosaic.version = 11 : i64} {
  func.func @_resmlp_kernel(%arg0: i32, %arg1: memref<256x128xbf16, #tpu.memory_space<vmem>>, %arg2: memref<128x128xbf16, #tpu.memory_space<vmem>>, %arg3: memref<1x128xf32, #tpu.memory_space<vmem>>, %arg4: memref<128x128xbf16, #tpu.memory_space<vmem>>, %arg5: memref<1x128xf32, #tpu.memory_space<vmem>>, %arg6: memref<128x128xbf16, #tpu.memory_space<vmem>>, %arg7: memref<1x128xf32, #tpu.memory_space<vmem>>, %arg8: memref<128x128xbf16, #tpu.memory_space<vmem>>, %arg9: memref<1x128xf32, #tpu.memory_space<vmem>>, %arg10: memref<256x128xf32, #tpu.memory_space<vmem>>) attributes {dimension_semantics = [#tpu.dimension_semantics<parallel>], iteration_bounds = array<i64: 4>, scalar_prefetch = 0 : i64, scratch_operands = 0 : i64, tpu.core_type = #tpu.core_type<tc>, window_params = [{transform_indices = @transform_0, window_bounds = array<i64: 256, 128>}, {pipeline_mode = #tpu.pipeline_mode<synchronous>, transform_indices = @transform_1, window_bounds = array<i64: 128, 128>}, {pipeline_mode = #tpu.pipeline_mode<synchronous>, transform_indices = @transform_2, window_bounds = array<i64: 1, 128>}, {pipeline_mode = #tpu.pipeline_mode<synchronous>, transform_indices = @transform_3, window_bounds = array<i64: 128, 128>}, {pipeline_mode = #tpu.pipeline_mode<synchronous>, transform_indices = @transform_4, window_bounds = array<i64: 1, 128>}, {pipeline_mode = #tpu.pipeline_mode<synchronous>, transform_indices = @transform_5, window_bounds = array<i64: 128, 128>}, {pipeline_mode = #tpu.pipeline_mode<synchronous>, transform_indices = @transform_6, window_bounds = array<i64: 1, 128>}, {pipeline_mode = #tpu.pipeline_mode<synchronous>, transform_indices = @transform_7, window_bounds = array<i64: 128, 128>}, {pipeline_mode = #tpu.pipeline_mode<synchronous>, transform_indices = @transform_8, window_bounds = array<i64: 1, 128>}, {transform_indices = @transform_9, window_bounds = array<i64: 256, 128>}]} {
    %c0 = arith.constant 0 : index
    %c0_0 = arith.constant 0 : index
    %0 = vector.load %arg2[%c0, %c0_0] : memref<128x128xbf16, #tpu.memory_space<vmem>>, vector<128x128xbf16>
    %c0_1 = arith.constant 0 : index
    %c0_2 = arith.constant 0 : index
    %1 = vector.load %arg3[%c0_1, %c0_2] : memref<1x128xf32, #tpu.memory_space<vmem>>, vector<1x128xf32>
    %c0_3 = arith.constant 0 : index
    %c0_4 = arith.constant 0 : index
    %2 = vector.load %arg1[%c0_3, %c0_4] : memref<256x128xbf16, #tpu.memory_space<vmem>>, vector<256x128xbf16>
    %cst = arith.constant dense<0.000000e+00> : vector<256x128xf32>
    %3 = tpu.matmul %2, %0, %cst {dimension_numbers = #tpu.dot_dimension_numbers<[1], [0], [0], [1], [0, 0, 1, 1], [], []>} : vector<256x128xbf16>, vector<128x128xbf16>, vector<256x128xf32> -> vector<256x128xf32>
    %4 = vector.broadcast %1 : vector<1x128xf32> to vector<256x128xf32>
    %5 = arith.addf %3, %4 : vector<256x128xf32>
    %c0_5 = arith.constant 0 : index
    %c0_6 = arith.constant 0 : index
    %6 = vector.load %arg4[%c0_5, %c0_6] : memref<128x128xbf16, #tpu.memory_space<vmem>>, vector<128x128xbf16>
    %c0_7 = arith.constant 0 : index
    %c0_8 = arith.constant 0 : index
    %7 = vector.load %arg5[%c0_7, %c0_8] : memref<1x128xf32, #tpu.memory_space<vmem>>, vector<1x128xf32>
    %8 = arith.truncf %5 : vector<256x128xf32> to vector<256x128xbf16>
    %cst_9 = arith.constant dense<0.000000e+00> : vector<256x128xf32>
    %9 = tpu.matmul %8, %6, %cst_9 {dimension_numbers = #tpu.dot_dimension_numbers<[1], [0], [0], [1], [0, 0, 1, 1], [], []>} : vector<256x128xbf16>, vector<128x128xbf16>, vector<256x128xf32> -> vector<256x128xf32>
    %10 = vector.broadcast %7 : vector<1x128xf32> to vector<256x128xf32>
    %11 = arith.addf %9, %10 : vector<256x128xf32>
    %cst_10 = arith.constant 0.000000e+00 : f32
    %12 = vector.broadcast %cst_10 : f32 to vector<256x128xf32>
    %13 = arith.maximumf %11, %12 : vector<256x128xf32>
    %14 = arith.addf %13, %5 : vector<256x128xf32>
    %c0_11 = arith.constant 0 : index
    %c0_12 = arith.constant 0 : index
    %15 = vector.load %arg6[%c0_11, %c0_12] : memref<128x128xbf16, #tpu.memory_space<vmem>>, vector<128x128xbf16>
    %c0_13 = arith.constant 0 : index
    %c0_14 = arith.constant 0 : index
    %16 = vector.load %arg7[%c0_13, %c0_14] : memref<1x128xf32, #tpu.memory_space<vmem>>, vector<1x128xf32>
    %17 = arith.truncf %14 : vector<256x128xf32> to vector<256x128xbf16>
    %cst_15 = arith.constant dense<0.000000e+00> : vector<256x128xf32>
    %18 = tpu.matmul %17, %15, %cst_15 {dimension_numbers = #tpu.dot_dimension_numbers<[1], [0], [0], [1], [0, 0, 1, 1], [], []>} : vector<256x128xbf16>, vector<128x128xbf16>, vector<256x128xf32> -> vector<256x128xf32>
    %19 = vector.broadcast %16 : vector<1x128xf32> to vector<256x128xf32>
    %20 = arith.addf %18, %19 : vector<256x128xf32>
    %cst_16 = arith.constant 0.000000e+00 : f32
    %21 = vector.broadcast %cst_16 : f32 to vector<256x128xf32>
    %22 = arith.maximumf %20, %21 : vector<256x128xf32>
    %23 = arith.addf %22, %14 : vector<256x128xf32>
    %c0_17 = arith.constant 0 : index
    %c0_18 = arith.constant 0 : index
    %24 = vector.load %arg8[%c0_17, %c0_18] : memref<128x128xbf16, #tpu.memory_space<vmem>>, vector<128x128xbf16>
    %c0_19 = arith.constant 0 : index
    %c0_20 = arith.constant 0 : index
    %25 = vector.load %arg9[%c0_19, %c0_20] : memref<1x128xf32, #tpu.memory_space<vmem>>, vector<1x128xf32>
    %26 = arith.truncf %23 : vector<256x128xf32> to vector<256x128xbf16>
    %cst_21 = arith.constant dense<0.000000e+00> : vector<256x128xf32>
    %27 = tpu.matmul %26, %24, %cst_21 {dimension_numbers = #tpu.dot_dimension_numbers<[1], [0], [0], [1], [0, 0, 1, 1], [], []>} : vector<256x128xbf16>, vector<128x128xbf16>, vector<256x128xf32> -> vector<256x128xf32>
    %28 = vector.broadcast %25 : vector<1x128xf32> to vector<256x128xf32>
    %29 = arith.addf %27, %28 : vector<256x128xf32>
    %c0_22 = arith.constant 0 : index
    %c0_23 = arith.constant 0 : index
    %30 = vector.load %arg10[%c0_22, %c0_23] : memref<256x128xf32, #tpu.memory_space<vmem>>, vector<256x128xf32>
    tpu.vector_store %arg10[%c0_22, %c0_23], %29 {strides = array<i32>} : memref<256x128xf32, #tpu.memory_space<vmem>>, vector<256x128xf32>,
    return
  }
  func.func @transform_0(%arg0: i32) -> (i32, i32) {
    %c0_i32 = arith.constant 0 : i32
    %c0_i32_0 = arith.constant 0 : i32
    return %arg0, %c0_i32 : i32, i32
  }
  func.func @transform_1(%arg0: i32) -> (i32, i32) {
    %c0_i32 = arith.constant 0 : i32
    %c0_i32_0 = arith.constant 0 : i32
    %c0_i32_1 = arith.constant 0 : i32
    return %c0_i32, %c0_i32_0 : i32, i32
  }
  func.func @transform_2(%arg0: i32) -> (i32, i32) {
    %c0_i32 = arith.constant 0 : i32
    %c0_i32_0 = arith.constant 0 : i32
    %c0_i32_1 = arith.constant 0 : i32
    return %c0_i32, %c0_i32_0 : i32, i32
  }
  func.func @transform_3(%arg0: i32) -> (i32, i32) {
    %c0_i32 = arith.constant 0 : i32
    %c0_i32_0 = arith.constant 0 : i32
    %c0_i32_1 = arith.constant 0 : i32
    return %c0_i32, %c0_i32_0 : i32, i32
  }
  func.func @transform_4(%arg0: i32) -> (i32, i32) {
    %c0_i32 = arith.constant 0 : i32
    %c0_i32_0 = arith.constant 0 : i32
    %c0_i32_1 = arith.constant 0 : i32
    return %c0_i32, %c0_i32_0 : i32, i32
  }
  func.func @transform_5(%arg0: i32) -> (i32, i32) {
    %c0_i32 = arith.constant 0 : i32
    %c0_i32_0 = arith.constant 0 : i32
    %c0_i32_1 = arith.constant 0 : i32
    return %c0_i32, %c0_i32_0 : i32, i32
  }
  func.func @transform_6(%arg0: i32) -> (i32, i32) {
    %c0_i32 = arith.constant 0 : i32
    %c0_i32_0 = arith.constant 0 : i32
    %c0_i32_1 = arith.constant 0 : i32
    return %c0_i32, %c0_i32_0 : i32, i32
  }
  func.func @transform_7(%arg0: i32) -> (i32, i32) {
    %c0_i32 = arith.constant 0 : i32
    %c0_i32_0 = arith.constant 0 : i32
    %c0_i32_1 = arith.constant 0 : i32
    return %c0_i32, %c0_i32_0 : i32, i32
  }
  func.func @transform_8(%arg0: i32) -> (i32, i32) {
    %c0_i32 = arith.constant 0 : i32
    %c0_i32_0 = arith.constant 0 : i32
    %c0_i32_1 = arith.constant 0 : i32
    return %c0_i32, %c0_i32_0 : i32, i32
  }
  func.func @transform_9(%arg0: i32) -> (i32, i32) {
    %c0_i32 = arith.constant 0 : i32
    %c0_i32_0 = arith.constant 0 : i32
    return %arg0, %c0_i32 : i32, i32
  }
}

</mosaic_0001>

<bundles_post_ra>
// kernel: tpu_custom_call.1
= control target key start
LH: loop header
LB: loop body
LE: loop exit
PB: predicated region body
PF: predicated region fallthrough
CT: control target
= control target key end

     0   :  { %s3330_s0 = inlined_call_operand.hbm [shape: bf16[1024,128], index: 0, kind: input, shape index: {}]   ;;  %s3331_s1 = inlined_call_operand.hbm [shape: bf16[128,128], index: 1, kind: input, shape index: {}]   ;;  %s3332_s2 = inlined_call_operand.vmem [shape: f32[1,128], index: 2, kind: input, shape index: {}]   ;;  %s3333_s3 = inlined_call_operand.hbm [shape: bf16[128,128], index: 3, kind: input, shape index: {}]   ;;  %s3334_s4 = inlined_call_operand.vmem [shape: f32[1,128], index: 4, kind: input, shape index: {}]   ;;  %s3335_s5 = inlined_call_operand.hbm [shape: bf16[128,128], index: 5, kind: input, shape index: {}]   ;;  %s3336_s6 = inlined_call_operand.vmem [shape: f32[1,128], index: 6, kind: input, shape index: {}]   ;;  %s3337_s7 = inlined_call_operand.hbm [shape: bf16[128,128], index: 7, kind: input, shape index: {}]   ;;  %s3338_s8 = inlined_call_operand.vmem [shape: f32[1,128], index: 8, kind: input, shape index: {}]   ;;  %s3339_s9 = inlined_call_operand.hbm [shape: f32[1024,128], index: 9, kind: output, shape index: {}]  }
   0x1   :  { %3346 = sst [smem:[#allocation18_spill]] %s3339_s9 }
   0x2   :  { %14 = vsyncpa [#allocation3], 0 }
   0x3   :  { %16 = vsyncpa [#allocation3 + $0x1], 0 }
   0x4   :  { %17 = vsyncpa [#allocation6], 0 }
   0x5   :  { %18 = vsyncpa [#allocation9], 0 }
   0x6   :  { %19 = vsyncpa [#allocation4], 0 }
   0x7   :  { %21 = vsyncpa [#allocation4 + $0x1], 0  ;;  %s2582_s30 = smov 0   ;;  %s2584_s10 = smov 0  }
   0x8   :  { %s2586_s11 = smov 0   ;;  %s2588_s12 = smov 0  }
   0x9 LB: > { %3347 = sst [smem:[#allocation16_spill]] %s2508_s30  ;;  %s2603_s13 = sadd.s32 4294967295, %s2520_s12   ;;  %s2520_s12 = sphi %s2588_s12, %s3370_s12   ;;  %s2516_s11 = sphi %s2586_s11, %s3369_s11   ;;  %s2512_s10 = sphi %s2584_s10, %s3368_s10   ;;  %s2508_s30 = sphi %s2582_s30, %s3367_s30  }
   0xa   : > { %s1801_s14 = sadd.s32 4294967294, %s2520_s12   ;;  %p47_p0 = scmp.ne.s32.totalorder %s2512_s10, %s2508_s30 }
   0xb   : > { %p3340_p1 = scmp.eq.s32.totalorder %s2603_s13, 0  ;;  %p245_p3 = scmp.eq.s32.totalorder %s1801_s14, 3 }
   0xc   : > { %p1802_p5 = scmp.ge.s32.totalorder %s2520_s12, 1  ;;  %p252_p7 = scmp.lt.s32.totalorder %s2520_s12, 5 }
   0xd   : > { %p2612_p4 = por %p3340_p1, %p47_p0  ;;  %p2617_p6 = por %p245_p3, %p47_p0 }
   0xe   : > { %p2622_p8 = pnand %p1802_p5, %p252_p7  ;;  %s2522_s18 = smov [#allocation5]  }
   0xf   : > { %s3348_s15 = scalar_select %p2612_p4, 1, 0 }
  0x10   : > { %s3349_s16 = scalar_select %p2617_p6, 1, 0 }
  0x11   : > { %s3351_s17 = scalar_select %p2622_p8, 1, 0 }
  0x12   : > { %3350 = sst [smem:[#allocation17_spill]] %s3349_s16  ;;  %s264_s19 = sshll.u32 %s2522_s18, 4  ;;  %s2626_s19 = int_to_ptr.vmem [resolvable:$true] %s264_s19 }
  0x13   : > { %p2185_p9 = pneg %p2622_p8  ;;  %s2523_s21 = smov [#allocation8]  }
  0x14   : > { %s296_s22 = sshll.u32 %s2523_s21, 4  ;;  %s2524_s23 = smov [#allocation7]   ;;  %s2636_s22 = int_to_ptr.vmem [resolvable:$true] %s296_s22 }
  0x15   : > { %p2632_p10 = pnand %p2185_p9, %p3340_p1  ;;  %s2638_s24 = sshll.u32 %s2524_s23, 4  ;;  %s281_s24 = int_to_ptr.vmem [resolvable:$true] %s2638_s24 }
  0x16   : > { %s2304_s27 = scalar_lea.hbm %s3331_s1, 1024 }
  0x17   : > { %p2305_p11 = scmp.ne.s32.totalorder %s3331_s1, %s2304_s27  ;;  %p2648_p12 = pneg %p2632_p10 }
  0x18   : > { %p2311_p3 = scmp.lt.u32.totalorder %s2304_s27, %s3331_s1 }
  0x19   : > { %p2307_p13 = pnand %p2648_p12, %p2305_p11 }
  0x1b   : > { %p2308_p0 = pneg %p2307_p13 }
  0x1d   : > { %p2313_p5 = pnand %p2311_p3, %p2308_p0 }
  0x1f   : > { %2316 = shalt.err (!%p2313_p5)
}
  0x20   : > { %s2317_s23 = scalar_lea.vmem %s2626_s19, 1024  ;;  %p2325_p2 = scmp.lt.s32.totalorder %s2626_s19, %s2626_s19 }
  0x21   : > { %p2318_p7 = scmp.ne.s32.totalorder %s2626_s19, %s2317_s23  ;;  %p2326_p6 = scmp.lt.s32.totalorder %s2317_s23, %s2317_s23 }
  0x23   : > { %p2320_p9 = pnand %p2318_p7, %p2648_p12  ;;  %p2327_p11 = por %p2326_p6, %p2325_p2 }
  0x25   : > { %p2321_p1 = pneg %p2320_p9 }
  0x27   : > { %p2328_p13 = pnand %p2327_p11, %p2321_p1 }
  0x29   : > { %2331 = shalt.err (!%p2328_p13)
}
  0x2a   : > { %s2525_s25 = smov 64   ;;  %s2526_s26 = smov 4  }
  0x2b   : > { %2188 = dma.hbm_to_vmem [thread:$0]  (!%p2632_p10), %s3331_s1, 1024, %s2626_s19, [#allocation6], %s2525_s25, %s2525_s25, %s2526_s26  }
  0x2c   : > { %s2332_s21 = scalar_lea.hbm %s3335_s5, 1024 }
  0x2d   : > { %p2333_p1 = scmp.ne.s32.totalorder %s3335_s5, %s2332_s21  ;;  %p2339_p0 = scmp.lt.u32.totalorder %s2332_s21, %s3335_s5 }
  0x2f   : > { %p2335_p2 = pnand %p2333_p1, %p2648_p12 }
  0x31   : > { %p2336_p6 = pneg %p2335_p2 }
  0x33   : > { %p2341_p3 = pnand %p2339_p0, %p2336_p6 }
  0x35   : > { %2344 = shalt.err (!%p2341_p3)
}
  0x36   : > { %s2345_s19 = scalar_lea.vmem %s2636_s22, 1024  ;;  %p2353_p11 = scmp.lt.s32.totalorder %s2636_s22, %s2636_s22 }
  0x37   : > { %p2346_p5 = scmp.ne.s32.totalorder %s2636_s22, %s2345_s19  ;;  %p2354_p13 = scmp.lt.s32.totalorder %s2345_s19, %s2345_s19 }
  0x39   : > { %p2348_p7 = pnand %p2346_p5, %p2648_p12  ;;  %p2355_p1 = por %p2354_p13, %p2353_p11 }
  0x3b   : > { %p2349_p9 = pneg %p2348_p7 }
  0x3d   : > { %p2356_p2 = pnand %p2355_p1, %p2349_p9 }
  0x3f   : > { %2359 = shalt.err (!%p2356_p2)
}
  0x40   : > { %2194 = dma.hbm_to_vmem [thread:$0]  (!%p2632_p10), %s3335_s5, 1024, %s2636_s22, [#allocation9], %s2525_s25, %s2525_s25, %s2526_s26  }
  0x41   : > { %s2360_s28 = scalar_lea.hbm %s3333_s3, 1024 }
  0x42   : > { %p2361_p6 = scmp.ne.s32.totalorder %s3333_s3, %s2360_s28  ;;  %p2367_p5 = scmp.lt.u32.totalorder %s2360_s28, %s3333_s3 }
  0x44   : > { %p2363_p0 = pnand %p2361_p6, %p2648_p12 }
  0x46   : > { %p2364_p3 = pneg %p2363_p0 }
  0x48   : > { %p2369_p7 = pnand %p2367_p5, %p2364_p3 }
  0x4a   : > { %2372 = shalt.err (!%p2369_p7)
}
  0x4b   : > { %s2373_s19 = scalar_lea.vmem %s281_s24, 1024  ;;  %p2381_p1 = scmp.lt.s32.totalorder %s281_s24, %s281_s24 }
  0x4c   : > { %p2374_p9 = scmp.ne.s32.totalorder %s281_s24, %s2373_s19  ;;  %p2382_p2 = scmp.lt.s32.totalorder %s2373_s19, %s2373_s19 }
  0x4e   : > { %p2376_p11 = pnand %p2374_p9, %p2648_p12  ;;  %p2383_p4 = por %p2382_p2, %p2381_p1 }
  0x50   : > { %p2377_p13 = pneg %p2376_p11 }
  0x52   : > { %p2384_p8 = pnand %p2383_p4, %p2377_p13 }
  0x54   : > { %2387 = shalt.err (!%p2384_p8)
}
  0x55   : > { %2191 = dma.hbm_to_vmem [thread:$0]  (!%p2632_p10), %s3333_s3, 1024, %s281_s24, [#allocation6], %s2525_s25, %s2525_s25, %s2526_s26  }
  0x56   : > { %s2527_s30 = smov [#allocation10]   ;;  %s2388_s29 = scalar_lea.hbm %s3337_s7, 1024 }
  0x57   : > { %s312_s16 = sshll.u32 %s2527_s30, 4  ;;  %p2389_p4 = scmp.ne.s32.totalorder %s3337_s7, %s2388_s29  ;;  %s313_s16 = int_to_ptr.vmem [resolvable:$true] %s312_s16 }
  0x58   : > { %p2395_p0 = scmp.lt.u32.totalorder %s2388_s29, %s3337_s7 }
  0x59   : > { %p2391_p8 = pnand %p2389_p4, %p2648_p12 }
  0x5b   : > { %p2392_p6 = pneg %p2391_p8 }
  0x5d   : > { %p2397_p3 = pnand %p2395_p0, %p2392_p6 }
  0x5f   : > { %2400 = shalt.err (!%p2397_p3)
}
  0x60   : > { %s2401_s24 = scalar_lea.vmem %s313_s16, 1024  ;;  %p2409_p11 = scmp.lt.s32.totalorder %s313_s16, %s313_s16 }
  0x61   : > { %p2402_p5 = scmp.ne.s32.totalorder %s313_s16, %s2401_s24  ;;  %p2410_p13 = scmp.lt.s32.totalorder %s2401_s24, %s2401_s24 }
  0x63   : > { %p2404_p7 = pnand %p2402_p5, %p2648_p12  ;;  %p2411_p1 = por %p2410_p13, %p2409_p11 }
  0x65   : > { %p2405_p9 = pneg %p2404_p7 }
  0x67   : > { %p2412_p2 = pnand %p2411_p1, %p2405_p9 }
  0x69   : > { %2415 = shalt.err (!%p2412_p2)
}
  0x6a   : > { %2197 = dma.hbm_to_vmem [thread:$0]  (!%p2632_p10), %s3337_s7, 1024, %s313_s16, [#allocation9], %s2525_s25, %s2525_s25, %s2526_s26  }
  0x6b   : > { %s2742_s14 = sadd.s32 1, %s2520_s12   ;;  %s34_s20 = sadd.s32 1, %s2516_s11 }
  0x6c   : > { %s31_s30 = ssub.s32 %s2520_s12, %s2742_s14  ;;  %p41_p12 = scmp.ne.s32.totalorder %s2516_s11, %s2512_s10 }
  0x6d   : > { %p32_p4 = scmp.eq.s32.totalorder %s31_s30, 0  ;;  %p42_p8 = scmp.eq.s32.totalorder %s2520_s12, 0 }
  0x6e   : > { %p3354_p6 = scmp.eq.s32.totalorder %s2603_s13, 3  ;;  %p2210_p3 = scmp.lt.s32.totalorder %s2520_s12, 4 }
  0x6f   : > { %s2758_s28 = scalar_select %p32_p4, %s2516_s11, %s34_s20  }
  0x70   : > { %p2752_p0 = por %p3354_p6, %p41_p12  ;;  %p43_p5 = por %p42_p8, %p41_p12 }
  0x71   : > { %s329_s29 = sand.u32 1, %s2516_s11   ;;  %s1875_s16 = sshll.u32 %s2520_s12, 11 }
  0x72   : > { %s1808_s18 = sshll.u32 %s329_s29, 7  ;;  %s2765_s19 = scalar_lea.hbm %s3330_s0, %s1875_s16 }
  0x73   : > { %s333_s24 = scalar_lea.vmem [#allocation2], %s1808_s18  ;;  %p2769_p10 = pnand %p2210_p3, %p43_p5 }
  0x74   : > { %s340_s22 = sshll.u32 %s333_s24, 4  ;;  %s2773_s20 = scalar_lea.sflag [#allocation3], %s329_s29  ;;  %s2767_s22 = int_to_ptr.vmem [resolvable:$true] %s340_s22 }
  0x75   : > { %s2416_s30 = scalar_lea.hbm %s2765_s19, 2048  ;;  %p2418_p9 = pneg %p2769_p10 }
  0x76   : > { %p2417_p7 = scmp.ne.s32.totalorder %s2765_s19, %s2416_s30  ;;  %s2421_s21 = scalar_lea.hbm %s3330_s0, 8192 }
  0x77   : > { %p2422_p1 = scmp.lt.u32.totalorder %s2765_s19, %s3330_s0  ;;  %p2423_p2 = scmp.lt.u32.totalorder %s2421_s21, %s2416_s30 }
  0x78   : > { %p2419_p11 = pnand %p2418_p9, %p2417_p7  ;;  %p2425_p4 = scmp.lt.u32.totalorder %s2416_s30, %s2765_s19 }
  0x79   : > { %p2424_p12 = por %p2423_p2, %p2422_p1 }
  0x7a   : > { %p2420_p13 = pneg %p2419_p11 }
  0x7b   : > { %p2426_p8 = por %p2425_p4, %p2424_p12 }
  0x7d   : > { %p2427_p6 = pnand %p2426_p8, %p2420_p13 }
  0x7f   : > { %2430 = shalt.err (!%p2427_p6)
}
  0x80   : > { %s2431_s29 = scalar_lea.vmem %s2767_s22, 2048  ;;  %s2528_s18 = smov [#allocation2]  }
  0x81   : > { %p2432_p3 = scmp.ne.s32.totalorder %s2767_s22, %s2431_s29  ;;  %s2436_s16 = sshll.u32 %s2528_s18, 4  ;;  %s2437_s16 = int_to_ptr.vmem [resolvable:$false] %s2436_s16 }
  0x82   : > { %s2438_s23 = scalar_lea.vmem %s2437_s16, 4096  ;;  %p2439_p11 = scmp.lt.s32.totalorder %s2767_s22, %s2437_s16 }
  0x83   : > { %p2434_p5 = pnand %p2432_p3, %p2418_p9  ;;  %p2440_p1 = scmp.lt.s32.totalorder %s2438_s23, %s2431_s29 }
  0x85   : > { %p2435_p7 = pneg %p2434_p5  ;;  %p2441_p2 = por %p2440_p1, %p2439_p11 }
  0x87   : > { %p2442_p12 = pnand %p2441_p2, %p2435_p7 }
  0x89   : > { %2445 = shalt.err (!%p2442_p12)
}
  0x8a   : > { %2201 = dma.hbm_to_vmem [thread:$0]  (!%p2769_p10), %s2765_s19, 2048, %s2767_s22, %s2773_s20, %s2525_s25, %s2525_s25, %s2526_s26  }
  0x8b   : > { %p3357_p9 = scmp.ne.s32.totalorder %s3351_s17, 0 }
  0x8c   : > { %s2807_s30 = sand.u32 (!%p3357_p9), 1, %s2512_s10   ;;  %p3358_p13 = scmp.ne.s32.totalorder (!%p3357_p9), %s3348_s15, 0 }
  0x8d   : > { %352 = sbr.rel (%p3357_p9) target bundleno = 1145 (0x479), region = 56  ;;  %s1812_s21 = sshll.u32 (!%p3357_p9), %s2807_s30, 7 }
  0x8e   : > { %s355_s24 = scalar_lea.sflag (!%p3357_p9), [#allocation3], %s2807_s30  ;;  %s2811_s29 = scalar_lea.vmem (!%p3357_p9), [#allocation2], %s1812_s21 }
  0x94   : > { %2491 = dma.done.wait (%p3358_p13), %s355_s24, 2048  }
  0x95   : > { %2493 = vsyncadd (%p3358_p13), %s355_s24, 4294965248  ;;  %p3359_p10 = scmp.eq.s32.totalorder %s2603_s13, 0 }
  0x97   : > { %2495 = dma.done.wait (%p3359_p10), [#allocation6], 2048   ;;  %p3360_p4 = pmov %p3359_p10 }
  0x99   : > { %2497 = vsyncadd (%p3360_p4), [#allocation6], 4294965248  ;;  %p3361_p8 = pmov %p3360_p4 }
  0x9a   : > { %p3362_p6 = pmov %p3360_p4 }
  0x9b   : > { %2499 = dma.done.wait (%p3361_p8), [#allocation9], 2048  }
  0x9c   : > { %2501 = vsyncadd (%p3362_p6), [#allocation9], 4294965248  ;;  %v2256_v0 = vld [vmem:[#allocation5] sm:$0xff]   ;;  %v2257_v1 = vld [vmem:[#allocation5 + $0x8] sm:$0xff]   ;;  %s1817_s9 = sshll.u32 %s2807_s30, 8  ;;  %s1876_s23 = sshll.u32 %s2603_s13, 12 }
  0x9d   : > { %1973 = vmatprep.subr.bf16.mxu0 %v2256_v0  ;;  %v2258_v2 = vld [vmem:[#allocation5 + $0x10] sm:$0xff]   ;;  %v2259_v3 = vld [vmem:[#allocation5 + $0x18] sm:$0xff]   ;;  %v2264_v4 = vld [vmem:[%s2811_s29] sm:$0xff]   ;;  %s3216_s16 = scalar_lea.vmem [#allocation11], %s1817_s9  ;;  %s3363_s15 = sld [smem:[#allocation18_spill]] }
  0x9e   : > { %1974 = vmatpush3.bf16.msra.mxu0 %v2256_v0  ;;  %1989 = vmatprep.mubr.bf16.mxu0 %v2264_v4  ;;  %v2260_v5 = vld [vmem:[#allocation5 + $0x20] sm:$0xff]   ;;  %v2261_v6 = vld [vmem:[#allocation5 + $0x28] sm:$0xff]   ;;  %v2262_v7 = vld [vmem:[#allocation5 + $0x30] sm:$0xff]   ;;  %s1690_s21 = sshll.u32 %s3216_s16, 4  ;;  %s1677_s13 = scalar_lea.sflag [#allocation4], %s2807_s30  ;;  %s3283_s21 = int_to_ptr.vmem [resolvable:$true] %s1690_s21 }
  0x9f   : > { %1975 = vmatprep.subr.bf16.mxu0 %v2257_v1  ;;  %v2263_v8 = vld [vmem:[#allocation5 + $0x38] sm:$0xff]   ;;  %v2280_v9 = vld [vmem:[#allocation7] sm:$0xff]   ;;  %v2281_v10 = vld [vmem:[#allocation7 + $0x8] sm:$0xff]   ;;  %s2446_s25 = scalar_lea.vmem %s3283_s21, 4096  ;;  %s2529_s26 = smov [#allocation11]  }
  0xa0   : > { %2021 = vmatprep.subr.bf16.mxu1 %v2280_v9  ;;  %v2265_v11 = vld [vmem:[%s2811_s29 + $0x8] sm:$0xff]   ;;  %v2282_v12 = vld [vmem:[#allocation7 + $0x10] sm:$0xff]   ;;  %v2283_v14 = vld [vmem:[#allocation7 + $0x18] sm:$0xff]   ;;  %p2447_p3 = scmp.ne.s32.totalorder %s3283_s21, %s2446_s25  ;;  %s2450_s19 = sshll.u32 %s2529_s26, 4  ;;  %s2451_s19 = int_to_ptr.vmem [resolvable:$false] %s2450_s19 }
  0xa1   : > { %2022 = vmatpush3.bf16.msra.mxu1 %v2280_v9  ;;  %v2266_v13 = vld [vmem:[%s2811_s29 + $0x10] sm:$0xff]   ;;  %v2284_v15 = vld [vmem:[#allocation7 + $0x20] sm:$0xff]   ;;  %v2267_v16 = vld [vmem:[%s2811_s29 + $0x18] sm:$0xff]   ;;  %s2452_s22 = scalar_lea.vmem %s2451_s19, 8192  ;;  %p2453_p11 = scmp.lt.s32.totalorder %s3283_s21, %s2451_s19 }
  0xa2   : > { %1976 = vmatpush3.bf16.msra.mxu0 %v2257_v1  ;;  %2023 = vmatprep.subr.bf16.mxu1 %v2281_v10  ;;  %v2268_v17 = vld [vmem:[%s2811_s29 + $0x20] sm:$0xff]   ;;  %v2285_v18 = vld [vmem:[#allocation7 + $0x28] sm:$0xff]   ;;  %v2270_v20 = vld [vmem:[%s2811_s29 + $0x30] sm:$0xff]   ;;  %p2448_p5 = pnand %p2447_p3, %p2752_p0  ;;  %p2454_p1 = scmp.lt.s32.totalorder %s2452_s22, %s2446_s25 }
  0xa3   : > { %1977 = vmatprep.subr.bf16.mxu0 %v2258_v2  ;;  %v2269_v19 = vld [vmem:[%s2811_s29 + $0x28] sm:$0xff]   ;;  %v2271_v21 = vld [vmem:[%s2811_s29 + $0x38] sm:$0xff]   ;;  %v2272_v22 = vld [vmem:[%s2811_s29 + $0x40] sm:$0xff]   ;;  %s3281_s17 = scalar_lea.hbm %s3363_s15, %s1876_s23 }
  0xa4   : > { %v2273_v23 = vld [vmem:[%s2811_s29 + $0x48] sm:$0xff]   ;;  %v2274_v24 = vld [vmem:[%s2811_s29 + $0x50] sm:$0xff]   ;;  %v2275_v25 = vld [vmem:[%s2811_s29 + $0x58] sm:$0xff]   ;;  %p2449_p7 = pneg %p2448_p5  ;;  %p2455_p2 = por %p2454_p1, %p2453_p11 }
  0xa5   : > { %2024 = vmatpush3.bf16.msra.mxu1 %v2281_v10  ;;  %v2276_v26 = vld [vmem:[%s2811_s29 + $0x60] sm:$0xff]   ;;  %v2277_v27 = vld [vmem:[%s2811_s29 + $0x68] sm:$0xff]   ;;  %v2278_v28 = vld [vmem:[%s2811_s29 + $0x70] sm:$0xff]  }
  0xa6   : > { %1978 = vmatpush3.bf16.msra.mxu0 %v2258_v2  ;;  %2025 = vmatprep.subr.bf16.mxu1 %v2282_v12  ;;  %v2279_v29 = vld [vmem:[%s2811_s29 + $0x78] sm:$0xff]   ;;  %v2286_v30 = vld [vmem:[#allocation7 + $0x30] sm:$0xff]   ;;  %v2288_v32 = vld [vmem:[#allocation8] sm:$0xff]   ;;  %p2456_p12 = pnand %p2455_p2, %p2449_p7 }
  0xa7   : > { %1979 = vmatprep.subr.bf16.mxu0 %v2259_v3  ;;  %v2287_v31 = vld [vmem:[#allocation7 + $0x38] sm:$0xff]   ;;  %v2289_v33 = vld [vmem:[#allocation8 + $0x8] sm:$0xff]   ;;  %v2290_v34 = vld [vmem:[#allocation8 + $0x10] sm:$0xff]  }
  0xa8   : > { %v2291_v35 = vld [vmem:[#allocation8 + $0x18] sm:$0xff]   ;;  %v2292_v36 = vld [vmem:[#allocation8 + $0x20] sm:$0xff]   ;;  %v2293_v37 = vld [vmem:[#allocation8 + $0x28] sm:$0xff]  }
  0xa9   : > { %2026 = vmatpush3.bf16.msra.mxu1 %v2282_v12  ;;  %v2294_v38 = vld [vmem:[#allocation8 + $0x30] sm:$0xff]   ;;  %v2844_v40 = vld [vmem:[%s3332_s2] ss:$0 sm:$0xff] }
  0xaa   : > { %1980 = vmatpush3.bf16.msra.mxu0 %v2259_v3  ;;  %2027 = vmatprep.subr.bf16.mxu1 %v2283_v14 }
  0xab   : > { %1981 = vmatprep.subr.bf16.mxu0 %v2260_v5 }
  0xad   : > { %2028 = vmatpush3.bf16.msra.mxu1 %v2283_v14 }
  0xae   : > { %1982 = vmatpush3.bf16.msra.mxu0 %v2260_v5  ;;  %2029 = vmatprep.subr.bf16.mxu1 %v2284_v15 }
  0xaf   : > { %1983 = vmatprep.subr.bf16.mxu0 %v2261_v6 }
  0xb1   : > { %2030 = vmatpush3.bf16.msra.mxu1 %v2284_v15 }
  0xb2   : > { %1984 = vmatpush3.bf16.msra.mxu0 %v2261_v6  ;;  %2031 = vmatprep.subr.bf16.mxu1 %v2285_v18 }
  0xb3   : > { %1985 = vmatprep.subr.bf16.mxu0 %v2262_v7 }
  0xb5   : > { %2032 = vmatpush3.bf16.msra.mxu1 %v2285_v18 }
  0xb6   : > { %1986 = vmatpush3.bf16.msra.mxu0 %v2262_v7  ;;  %2033 = vmatprep.subr.bf16.mxu1 %v2286_v30 }
  0xb7   : > { %1987 = vmatprep.subr.bf16.mxu0 %v2263_v8 }
  0xb9   : > { %2034 = vmatpush3.bf16.msra.mxu1 %v2286_v30 }
  0xba   : > { %1988 = vmatpush3.bf16.msra.mxu0 %v2263_v8  ;;  %2035 = vmatprep.subr.bf16.mxu1 %v2287_v31 }
  0xbb   : > { %2069 = vmatprep.subr.bf16.mxu0 %v2288_v32 }
  0xbd   : > { %1990 = vmatmul.mubr.bf16.vlgmr.msra.gmra.mrb[0].mxu0 %v2265_v11  ;;  %2036 = vmatpush3.bf16.msra.mxu1 %v2287_v31 }
  0xbe   : > { %1993 = vmatprep.mubr.bf16.mxu0 %v2266_v13  ;;  %2070 = vmatpush3.bf16.msra.mxu0 %v2288_v32 }
  0xbf   : > { %2071 = vmatprep.subr.bf16.mxu0 %v2289_v33 }
  0xc2   : > { %2072 = vmatpush3.bf16.msra.mxu0 %v2289_v33 }
  0xc3   : > { %2073 = vmatprep.subr.bf16.mxu0 %v2290_v34 }
  0xc5   : > { %1994 = vmatmul.mubr.bf16.gmra.mrb[4].mxu0 %v2267_v16 }
  0xc6   : > { %1997 = vmatprep.mubr.bf16.mxu0 %v2268_v17  ;;  %2074 = vmatpush3.bf16.msra.mxu0 %v2290_v34 }
  0xc7   : > { %2075 = vmatprep.subr.bf16.mxu0 %v2291_v35 }
  0xca   : > { %2076 = vmatpush3.bf16.msra.mxu0 %v2291_v35 }
  0xcb   : > { %2077 = vmatprep.subr.bf16.mxu0 %v2292_v36 }
  0xcd   : > { %1998 = vmatmul.mubr.bf16.gmra.mrb[8].mxu0 %v2269_v19 }
  0xce   : > { %2001 = vmatprep.mubr.bf16.mxu0 %v2270_v20  ;;  %2078 = vmatpush3.bf16.msra.mxu0 %v2292_v36 }
  0xcf   : > { %2079 = vmatprep.subr.bf16.mxu0 %v2293_v37 }
  0xd2   : > { %2080 = vmatpush3.bf16.msra.mxu0 %v2293_v37 }
  0xd3   : > { %2081 = vmatprep.subr.bf16.mxu0 %v2294_v38 }
  0xd5   : > { %2002 = vmatmul.mubr.bf16.gmra.mrb[12].mxu0 %v2271_v21 }
  0xd6   : > { %2005 = vmatprep.mubr.bf16.mxu0 %v2272_v22  ;;  %2082 = vmatpush3.bf16.msra.mxu0 %v2294_v38 }
  0xdd   : > { %2006 = vmatmul.mubr.bf16.gmra.mrb[16].mxu0 %v2273_v23 }
  0xde   : > { %2009 = vmatprep.mubr.bf16.mxu0 %v2274_v24 }
  0xe5   : > { %2010 = vmatmul.mubr.bf16.gmra.mrb[20].mxu0 %v2275_v25 }
  0xe6   : > { %2013 = vmatprep.mubr.bf16.mxu0 %v2276_v26 }
  0xed   : > { %2014 = vmatmul.mubr.bf16.gmra.mrb[24].mxu0 %v2277_v27 }
  0xee   : > { %2017 = vmatprep.mubr.bf16.mxu0 %v2278_v28 }
  0xf5   : > { %2018 = vmatmul.mubr.bf16.gmra.mrb[28].mxu0 %v2279_v29 }
 0x190   : > { %v1991_v39 = vpop.f32.mrb[0].mxu0 }
 0x191   : > { %v645_v41 = vpop.f32.mrb[1].mxu0  ;;  %v2856_v47 = vadd.f32 %v1991_v39, %v2844_v40 }
 0x192   : > { %v1992_v42 = vpop.f32.mrb[2].mxu0  ;;  %v2850_v45 = vadd.f32 %v2844_v40, %v645_v41 }
 0x193   : > { %v2847_v43 = vadd.f32 %v1992_v42, %v2844_v40  ;;  %v648_v44 = vpop.f32.mrb[3].mxu0 }
 0x194   : > { %v2853_v46 = vadd.f32 %v2844_v40, %v648_v44 }
 0x195   : > { %v790_v49 = vpack.c.bf16 %v2847_v43, %v2856_v47 }
 0x196   : > { %v789_v48 = vpack.c.bf16 %v2853_v46, %v2850_v45 }
 0x198   : > { %v1995_v50 = vpop.f32.mrb[4].mxu0  ;;  %2037 = vmatprep.mubr.bf16.mxu1 %v789_v48 }
 0x199   : > { %v661_v51 = vpop.f32.mrb[5].mxu0  ;;  %2038 = vmatmul.mubr.bf16.vlgmr.msra.gmra.mrb[0].mxu1 %v790_v49  ;;  %v2872_v57 = vadd.f32 %v1995_v50, %v2844_v40 }
 0x19a   : > { %v1996_v52 = vpop.f32.mrb[6].mxu0  ;;  %v2866_v55 = vadd.f32 %v2844_v40, %v661_v51 }
 0x19b   : > { %v2863_v53 = vadd.f32 %v1996_v52, %v2844_v40  ;;  %v664_v54 = vpop.f32.mrb[7].mxu0 }
 0x19c   : > { %v2869_v56 = vadd.f32 %v2844_v40, %v664_v54 }
 0x19d   : > { %v792_v59 = vpack.c.bf16 %v2863_v53, %v2872_v57 }
 0x19e   : > { %v791_v58 = vpack.c.bf16 %v2869_v56, %v2866_v55 }
 0x1a0   : > { %v1999_v60 = vpop.f32.mrb[8].mxu0  ;;  %2041 = vmatprep.mubr.bf16.mxu1 %v791_v58 }
 0x1a1   : > { %v677_v61 = vpop.f32.mrb[9].mxu0  ;;  %2042 = vmatmul.mubr.bf16.gmra.mrb[4].mxu1 %v792_v59  ;;  %v2888_v3 = vadd.f32 %v1999_v60, %v2844_v40 }
 0x1a2   : > { %v2000_v62 = vpop.f32.mrb[10].mxu0  ;;  %v2882_v1 = vadd.f32 %v2844_v40, %v677_v61 }
 0x1a3   : > { %v2879_v63 = vadd.f32 %v2000_v62, %v2844_v40  ;;  %v680_v0 = vpop.f32.mrb[11].mxu0 }
 0x1a4   : > { %v2885_v2 = vadd.f32 %v2844_v40, %v680_v0 }
 0x1a5   : > { %v794_v5 = vpack.c.bf16 %v2879_v63, %v2888_v3 }
 0x1a6   : > { %v793_v4 = vpack.c.bf16 %v2885_v2, %v2882_v1 }
 0x1a8   : > { %v2003_v6 = vpop.f32.mrb[12].mxu0  ;;  %2045 = vmatprep.mubr.bf16.mxu1 %v793_v4 }
 0x1a9   : > { %v693_v7 = vpop.f32.mrb[13].mxu0  ;;  %2046 = vmatmul.mubr.bf16.gmra.mrb[8].mxu1 %v794_v5  ;;  %v2904_v13 = vadd.f32 %v2003_v6, %v2844_v40  ;;  %v2295_v5 = vld [vmem:[#allocation8 + $0x38] sm:$0xff]   ;;  %v2296_v6 = vld [vmem:[#allocation10] sm:$0xff]  }
 0x1aa   : > { %v2004_v8 = vpop.f32.mrb[14].mxu0  ;;  %v2898_v11 = vadd.f32 %v2844_v40, %v693_v7  ;;  %2083 = vmatprep.subr.bf16.mxu0 %v2295_v5  ;;  %v2297_v7 = vld [vmem:[#allocation10 + $0x8] sm:$0xff]   ;;  %2117 = vmatprep.subr.bf16.mxu1 %v2296_v6 }
 0x1ab   : > { %v2895_v9 = vadd.f32 %v2004_v8, %v2844_v40  ;;  %v696_v10 = vpop.f32.mrb[15].mxu0  ;;  %2084 = vmatpush3.bf16.msra.mxu0 %v2295_v5  ;;  %2118 = vmatpush3.bf16.msra.mxu1 %v2296_v6  ;;  %v2298_v8 = vld [vmem:[#allocation10 + $0x10] sm:$0xff]  }
 0x1ac   : > { %v2901_v12 = vadd.f32 %v2844_v40, %v696_v10  ;;  %2119 = vmatprep.subr.bf16.mxu1 %v2297_v7  ;;  %v2300_v10 = vld [vmem:[#allocation10 + $0x20] sm:$0xff]  }
 0x1ad   : > { %v796_v15 = vpack.c.bf16 %v2895_v9, %v2904_v13 }
 0x1ae   : > { %v795_v14 = vpack.c.bf16 %v2901_v12, %v2898_v11 }
 0x1af   : > { %2120 = vmatpush3.bf16.msra.mxu1 %v2297_v7 }
 0x1b0   : > { %v2007_v16 = vpop.f32.mrb[16].mxu0  ;;  %2049 = vmatprep.mubr.bf16.mxu1 %v795_v14  ;;  %2121 = vmatprep.subr.bf16.mxu1 %v2298_v8  ;;  %v2301_v14 = vld [vmem:[#allocation10 + $0x28] sm:$0xff]  }
 0x1b1   : > { %v709_v17 = vpop.f32.mrb[17].mxu0  ;;  %2050 = vmatmul.mubr.bf16.gmra.mrb[12].mxu1 %v796_v15  ;;  %v2920_v23 = vadd.f32 %v2007_v16, %v2844_v40  ;;  %v2302_v15 = vld [vmem:[#allocation10 + $0x30] sm:$0xff]   ;;  %v2977_v16 = vld [vmem:[%s3334_s4] ss:$0 sm:$0xff] }
 0x1b2   : > { %v2008_v18 = vpop.f32.mrb[18].mxu0  ;;  %v2914_v21 = vadd.f32 %v2844_v40, %v709_v17 }
 0x1b3   : > { %v2911_v19 = vadd.f32 %v2008_v18, %v2844_v40  ;;  %v712_v20 = vpop.f32.mrb[19].mxu0  ;;  %2122 = vmatpush3.bf16.msra.mxu1 %v2298_v8 }
 0x1b4   : > { %v2917_v22 = vadd.f32 %v2844_v40, %v712_v20 }
 0x1b5   : > { %v798_v25 = vpack.c.bf16 %v2911_v19, %v2920_v23 }
 0x1b6   : > { %v797_v24 = vpack.c.bf16 %v2917_v22, %v2914_v21 }
 0x1b8   : > { %v2011_v26 = vpop.f32.mrb[20].mxu0  ;;  %2053 = vmatprep.mubr.bf16.mxu1 %v797_v24 }
 0x1b9   : > { %v725_v27 = vpop.f32.mrb[21].mxu0  ;;  %2054 = vmatmul.mubr.bf16.gmra.mrb[16].mxu1 %v798_v25  ;;  %v2936_v33 = vadd.f32 %v2011_v26, %v2844_v40 }
 0x1ba   : > { %v2012_v28 = vpop.f32.mrb[22].mxu0  ;;  %v2930_v31 = vadd.f32 %v2844_v40, %v725_v27 }
 0x1bb   : > { %v2927_v29 = vadd.f32 %v2012_v28, %v2844_v40  ;;  %v728_v30 = vpop.f32.mrb[23].mxu0 }
 0x1bc   : > { %v2933_v32 = vadd.f32 %v2844_v40, %v728_v30 }
 0x1bd   : > { %v800_v35 = vpack.c.bf16 %v2927_v29, %v2936_v33 }
 0x1be   : > { %v799_v34 = vpack.c.bf16 %v2933_v32, %v2930_v31 }
 0x1c0   : > { %v2015_v36 = vpop.f32.mrb[24].mxu0  ;;  %2057 = vmatprep.mubr.bf16.mxu1 %v799_v34 }
 0x1c1   : > { %v741_v37 = vpop.f32.mrb[25].mxu0  ;;  %2058 = vmatmul.mubr.bf16.gmra.mrb[20].mxu1 %v800_v35  ;;  %v2952_v48 = vadd.f32 %v2015_v36, %v2844_v40 }
 0x1c2   : > { %v2016_v38 = vpop.f32.mrb[26].mxu0  ;;  %v2946_v42 = vadd.f32 %v2844_v40, %v741_v37 }
 0x1c3   : > { %v2943_v39 = vadd.f32 %v2016_v38, %v2844_v40  ;;  %v744_v41 = vpop.f32.mrb[27].mxu0 }
 0x1c4   : > { %v2949_v44 = vadd.f32 %v2844_v40, %v744_v41 }
 0x1c5   : > { %v802_v50 = vpack.c.bf16 %v2943_v39, %v2952_v48 }
 0x1c6   : > { %v801_v49 = vpack.c.bf16 %v2949_v44, %v2946_v42 }
 0x1c8   : > { %v2019_v51 = vpop.f32.mrb[28].mxu0  ;;  %2061 = vmatprep.mubr.bf16.mxu1 %v801_v49 }
 0x1c9   : > { %v757_v52 = vpop.f32.mrb[29].mxu0  ;;  %2062 = vmatmul.mubr.bf16.gmra.mrb[24].mxu1 %v802_v50  ;;  %v2968_v62 = vadd.f32 %v2019_v51, %v2844_v40 }
 0x1ca   : > { %v2020_v54 = vpop.f32.mrb[30].mxu0  ;;  %v2962_v60 = vadd.f32 %v2844_v40, %v757_v52 }
 0x1cb   : > { %v2959_v58 = vadd.f32 %v2020_v54, %v2844_v40  ;;  %v760_v59 = vpop.f32.mrb[31].mxu0 }
 0x1cc   : > { %v2965_v61 = vadd.f32 %v2844_v40, %v760_v59  ;;  %v2299_v40 = vld [vmem:[#allocation10 + $0x18] sm:$0xff]  }
 0x1cd   : > { %v804_v4 = vpack.c.bf16 %v2959_v58, %v2968_v62  ;;  %2123 = vmatprep.subr.bf16.mxu1 %v2299_v40 }
 0x1ce   : > { %v803_v0 = vpack.c.bf16 %v2965_v61, %v2962_v60  ;;  %2124 = vmatpush3.bf16.msra.mxu1 %v2299_v40 }
 0x1cf   : > { %2125 = vmatprep.subr.bf16.mxu1 %v2300_v10 }
 0x1d0   : > { %2065 = vmatprep.mubr.bf16.mxu1 %v803_v0 }
 0x1d1   : > { %2066 = vmatmul.mubr.bf16.gmra.mrb[28].mxu1 %v804_v4 }
 0x1d2   : > { %2126 = vmatpush3.bf16.msra.mxu1 %v2300_v10 }
 0x1d3   : > { %2127 = vmatprep.subr.bf16.mxu1 %v2301_v14 }
 0x1d6   : > { %2128 = vmatpush3.bf16.msra.mxu1 %v2301_v14 }
 0x1d7   : > { %2129 = vmatprep.subr.bf16.mxu1 %v2302_v15 }
 0x1da   : > { %2130 = vmatpush3.bf16.msra.mxu1 %v2302_v15 }
 0x26c   : > { %v2039_v17 = vpop.f32.mrb[0].mxu1 }
 0x26d   : > { %v902_v18 = vadd.f32 %v2039_v17, %v2977_v16  ;;  %v893_v20 = vpop.f32.mrb[1].mxu1 }
 0x26e   : > { %v894_v24 = vadd.f32 %v2977_v16, %v893_v20  ;;  %v2040_v25 = vpop.f32.mrb[2].mxu1 }
 0x26f   : > { %v905_v26 = vadd.f32 %v2040_v25, %v2977_v16  ;;  %v896_v27 = vpop.f32.mrb[3].mxu1  ;;  %v1022_v34 = vmax.f32 %v902_v18, 0.0 }
 0x270   : > { %v1020_v28 = vmax.f32 %v894_v24, 0.0  ;;  %v897_v30 = vadd.f32 %v2977_v16, %v896_v27 }
 0x271   : > { %v1023_v35 = vmax.f32 %v905_v26, 0.0  ;;  %v2993_v50 = vadd.f32 %v1022_v34, %v2856_v47 }
 0x272   : > { %v1021_v36 = vmax.f32 %v897_v30, 0.0  ;;  %v2987_v38 = vadd.f32 %v1020_v28, %v2850_v45 }
 0x273   : > { %v2984_v37 = vadd.f32 %v1023_v35, %v2847_v43 }
 0x274   : > { %v2990_v41 = vadd.f32 %v1021_v36, %v2853_v46  ;;  %v2043_v49 = vpop.f32.mrb[4].mxu1 }
 0x275   : > { %v918_v51 = vadd.f32 %v2043_v49, %v2977_v16  ;;  %v909_v52 = vpop.f32.mrb[5].mxu1  ;;  %v1102_v45 = vpack.c.bf16 %v2984_v37, %v2993_v50 }
 0x276   : > { %v910_v54 = vadd.f32 %v2977_v16, %v909_v52  ;;  %v2044_v59 = vpop.f32.mrb[6].mxu1  ;;  %v1101_v43 = vpack.c.bf16 %v2990_v41, %v2987_v38 }
 0x277   : > { %v921_v0 = vadd.f32 %v2044_v59, %v2977_v16  ;;  %v912_v46 = vpop.f32.mrb[7].mxu1  ;;  %v1026_v47 = vmax.f32 %v918_v51, 0.0 }
 0x278   : > { %v1024_v4 = vmax.f32 %v910_v54, 0.0  ;;  %v913_v5 = vadd.f32 %v2977_v16, %v912_v46  ;;  %2085 = vmatprep.mubr.bf16.mxu0 %v1101_v43 }
 0x279   : > { %v1027_v6 = vmax.f32 %v921_v0, 0.0  ;;  %2086 = vmatmul.mubr.bf16.vlgmr.msra.gmra.mrb[32].mxu0 %v1102_v45  ;;  %v3013_v15 = vadd.f32 %v1026_v47, %v2872_v57 }
 0x27a   : > { %v1025_v7 = vmax.f32 %v913_v5, 0.0  ;;  %v3007_v40 = vadd.f32 %v1024_v4, %v2866_v55 }
 0x27b   : > { %v3004_v8 = vadd.f32 %v1027_v6, %v2863_v53 }
 0x27c   : > { %v3010_v10 = vadd.f32 %v1025_v7, %v2869_v56  ;;  %v2047_v14 = vpop.f32.mrb[8].mxu1 }
 0x27d   : > { %v934_v17 = vadd.f32 %v2047_v14, %v2977_v16  ;;  %v925_v18 = vpop.f32.mrb[9].mxu1  ;;  %v1104_v56 = vpack.c.bf16 %v3004_v8, %v3013_v15 }
 0x27e   : > { %v926_v20 = vadd.f32 %v2977_v16, %v925_v18  ;;  %v2048_v24 = vpop.f32.mrb[10].mxu1  ;;  %v1103_v53 = vpack.c.bf16 %v3010_v10, %v3007_v40 }
 0x27f   : > { %v937_v25 = vadd.f32 %v2048_v24, %v2977_v16  ;;  %v928_v55 = vpop.f32.mrb[11].mxu1  ;;  %v1030_v57 = vmax.f32 %v934_v17, 0.0 }
 0x280   : > { %v1028_v26 = vmax.f32 %v926_v20, 0.0  ;;  %v929_v27 = vadd.f32 %v2977_v16, %v928_v55  ;;  %2089 = vmatprep.mubr.bf16.mxu0 %v1103_v53 }
 0x281   : > { %v1031_v28 = vmax.f32 %v937_v25, 0.0  ;;  %2090 = vmatmul.mubr.bf16.gmra.mrb[36].mxu0 %v1104_v56  ;;  %v3033_v51 = vadd.f32 %v1030_v57, %v2888_v3 }
 0x282   : > { %v1029_v30 = vmax.f32 %v929_v27, 0.0  ;;  %v3027_v35 = vadd.f32 %v1028_v26, %v2882_v1 }
 0x283   : > { %v3024_v34 = vadd.f32 %v1031_v28, %v2879_v63 }
 0x284   : > { %v3030_v36 = vadd.f32 %v1029_v30, %v2885_v2  ;;  %v2051_v49 = vpop.f32.mrb[12].mxu1 }
 0x285   : > { %v950_v52 = vadd.f32 %v2051_v49, %v2977_v16  ;;  %v941_v54 = vpop.f32.mrb[13].mxu1  ;;  %v1106_v2 = vpack.c.bf16 %v3024_v34, %v3033_v51 }
 0x286   : > { %v942_v59 = vadd.f32 %v2977_v16, %v941_v54  ;;  %v2052_v43 = vpop.f32.mrb[14].mxu1  ;;  %v1105_v63 = vpack.c.bf16 %v3030_v36, %v3027_v35 }
 0x287   : > { %v953_v45 = vadd.f32 %v2052_v43, %v2977_v16  ;;  %v944_v1 = vpop.f32.mrb[15].mxu1  ;;  %v1034_v3 = vmax.f32 %v950_v52, 0.0 }
 0x288   : > { %v1032_v0 = vmax.f32 %v942_v59, 0.0  ;;  %v945_v46 = vadd.f32 %v2977_v16, %v944_v1  ;;  %2093 = vmatprep.mubr.bf16.mxu0 %v1105_v63 }
 0x289   : > { %v1035_v4 = vmax.f32 %v953_v45, 0.0  ;;  %2094 = vmatmul.mubr.bf16.gmra.mrb[40].mxu0 %v1106_v2  ;;  %v3053_v17 = vadd.f32 %v1034_v3, %v2904_v13 }
 0x28a   : > { %v1033_v5 = vmax.f32 %v945_v46, 0.0  ;;  %v3047_v6 = vadd.f32 %v1032_v0, %v2898_v11 }
 0x28b   : > { %v3044_v47 = vadd.f32 %v1035_v4, %v2895_v9 }
 0x28c   : > { %v3050_v7 = vadd.f32 %v1033_v5, %v2901_v12  ;;  %v2055_v14 = vpop.f32.mrb[16].mxu1 }
 0x28d   : > { %v966_v18 = vadd.f32 %v2055_v14, %v2977_v16  ;;  %v957_v20 = vpop.f32.mrb[17].mxu1  ;;  %v1108_v12 = vpack.c.bf16 %v3044_v47, %v3053_v17 }
 0x28e   : > { %v958_v24 = vadd.f32 %v2977_v16, %v957_v20  ;;  %v2056_v53 = vpop.f32.mrb[18].mxu1  ;;  %v1107_v9 = vpack.c.bf16 %v3050_v7, %v3047_v6 }
 0x28f   : > { %v969_v25 = vadd.f32 %v2056_v53, %v2977_v16  ;;  %v960_v11 = vpop.f32.mrb[19].mxu1  ;;  %v1038_v13 = vmax.f32 %v966_v18, 0.0 }
 0x290   : > { %v1036_v55 = vmax.f32 %v958_v24, 0.0  ;;  %v961_v56 = vadd.f32 %v2977_v16, %v960_v11  ;;  %2097 = vmatprep.mubr.bf16.mxu0 %v1107_v9 }
 0x291   : > { %v1039_v26 = vmax.f32 %v969_v25, 0.0  ;;  %2098 = vmatmul.mubr.bf16.gmra.mrb[44].mxu0 %v1108_v12  ;;  %v3073_v52 = vadd.f32 %v1038_v13, %v2920_v23 }
 0x292   : > { %v1037_v27 = vmax.f32 %v961_v56, 0.0  ;;  %v3067_v28 = vadd.f32 %v1036_v55, %v2914_v21 }
 0x293   : > { %v3064_v57 = vadd.f32 %v1039_v26, %v2911_v19 }
 0x294   : > { %v3070_v30 = vadd.f32 %v1037_v27, %v2917_v22  ;;  %v2059_v49 = vpop.f32.mrb[20].mxu1 }
 0x295   : > { %v982_v54 = vadd.f32 %v2059_v49, %v2977_v16  ;;  %v973_v59 = vpop.f32.mrb[21].mxu1  ;;  %v1110_v22 = vpack.c.bf16 %v3064_v57, %v3073_v52 }
 0x296   : > { %v974_v43 = vadd.f32 %v2977_v16, %v973_v59  ;;  %v2060_v63 = vpop.f32.mrb[22].mxu1  ;;  %v1109_v19 = vpack.c.bf16 %v3070_v30, %v3067_v28 }
 0x297   : > { %v985_v45 = vadd.f32 %v2060_v63, %v2977_v16  ;;  %v976_v21 = vpop.f32.mrb[23].mxu1  ;;  %v1042_v23 = vmax.f32 %v982_v54, 0.0 }
 0x298   : > { %v1040_v1 = vmax.f32 %v974_v43, 0.0  ;;  %v977_v2 = vadd.f32 %v2977_v16, %v976_v21  ;;  %2101 = vmatprep.mubr.bf16.mxu0 %v1109_v19 }
 0x299   : > { %v1043_v0 = vmax.f32 %v985_v45, 0.0  ;;  %2102 = vmatmul.mubr.bf16.gmra.mrb[48].mxu0 %v1110_v22  ;;  %v3093_v18 = vadd.f32 %v1042_v23, %v2936_v33 }
 0x29a   : > { %v1041_v46 = vmax.f32 %v977_v2, 0.0  ;;  %v3087_v4 = vadd.f32 %v1040_v1, %v2930_v31 }
 0x29b   : > { %v3084_v3 = vadd.f32 %v1043_v0, %v2927_v29 }
 0x29c   : > { %v3090_v5 = vadd.f32 %v1041_v46, %v2933_v32  ;;  %v2063_v14 = vpop.f32.mrb[24].mxu1 }
 0x29d   : > { %v998_v20 = vadd.f32 %v2063_v14, %v2977_v16  ;;  %v989_v24 = vpop.f32.mrb[25].mxu1  ;;  %v1112_v32 = vpack.c.bf16 %v3084_v3, %v3093_v18 }
 0x29e   : > { %v990_v53 = vadd.f32 %v2977_v16, %v989_v24  ;;  %v2064_v9 = vpop.f32.mrb[26].mxu1  ;;  %v1111_v29 = vpack.c.bf16 %v3090_v5, %v3087_v4  ;;  %v2303_v24 = vld [vmem:[#allocation10 + $0x38] sm:$0xff]  }
 0x29f   : > { %v1001_v25 = vadd.f32 %v2064_v9, %v2977_v16  ;;  %v992_v31 = vpop.f32.mrb[27].mxu1  ;;  %v1046_v33 = vmax.f32 %v998_v20, 0.0  ;;  %2131 = vmatprep.subr.bf16.mxu1 %v2303_v24 }
 0x2a0   : > { %v1044_v11 = vmax.f32 %v990_v53, 0.0  ;;  %v993_v12 = vadd.f32 %v2977_v16, %v992_v31  ;;  %2105 = vmatprep.mubr.bf16.mxu0 %v1111_v29  ;;  %2132 = vmatpush3.bf16.msra.mxu1 %v2303_v24 }
 0x2a1   : > { %v1047_v55 = vmax.f32 %v1001_v25, 0.0  ;;  %2106 = vmatmul.mubr.bf16.gmra.mrb[52].mxu0 %v1112_v32  ;;  %v3113_v54 = vadd.f32 %v1046_v33, %v2952_v48 }
 0x2a2   : > { %v1045_v56 = vmax.f32 %v993_v12, 0.0  ;;  %v3107_v26 = vadd.f32 %v1044_v11, %v2946_v42 }
 0x2a3   : > { %v3104_v13 = vadd.f32 %v1047_v55, %v2943_v39 }
 0x2a4   : > { %v3110_v27 = vadd.f32 %v1045_v56, %v2949_v44  ;;  %v2067_v49 = vpop.f32.mrb[28].mxu1 }
 0x2a5   : > { %v1014_v59 = vadd.f32 %v2067_v49, %v2977_v16  ;;  %v1005_v43 = vpop.f32.mrb[29].mxu1  ;;  %v1114_v44 = vpack.c.bf16 %v3104_v13, %v3113_v54 }
 0x2a6   : > { %v1006_v63 = vadd.f32 %v2977_v16, %v1005_v43  ;;  %v2068_v19 = vpop.f32.mrb[30].mxu1  ;;  %v1113_v39 = vpack.c.bf16 %v3110_v27, %v3107_v26 }
 0x2a7   : > { %v1017_v45 = vadd.f32 %v2068_v19, %v2977_v16  ;;  %v1008_v42 = vpop.f32.mrb[31].mxu1  ;;  %v1050_v48 = vmax.f32 %v1014_v59, 0.0 }
 0x2a8   : > { %v1048_v21 = vmax.f32 %v1006_v63, 0.0  ;;  %v1009_v22 = vadd.f32 %v2977_v16, %v1008_v42  ;;  %2109 = vmatprep.mubr.bf16.mxu0 %v1113_v39 }
 0x2a9   : > { %v1051_v1 = vmax.f32 %v1017_v45, 0.0  ;;  %2110 = vmatmul.mubr.bf16.gmra.mrb[56].mxu0 %v1114_v44  ;;  %v3133_v14 = vadd.f32 %v1050_v48, %v2968_v62 }
 0x2aa   : > { %v1049_v2 = vmax.f32 %v1009_v22, 0.0  ;;  %v3127_v0 = vadd.f32 %v1048_v21, %v2962_v60 }
 0x2ab   : > { %v3124_v23 = vadd.f32 %v1051_v1, %v2959_v58  ;;  %v3142_v58 = vld [vmem:[%s3336_s6] ss:$0 sm:$0xff] }
 0x2ac   : > { %v3130_v46 = vadd.f32 %v1049_v2, %v2965_v61 }
 0x2ad   : > { %v1116_v20 = vpack.c.bf16 %v3124_v23, %v3133_v14 }
 0x2ae   : > { %v1115_v16 = vpack.c.bf16 %v3130_v46, %v3127_v0 }
 0x2b0   : > { %2113 = vmatprep.mubr.bf16.mxu0 %v1115_v16 }
 0x2b1   : > { %2114 = vmatmul.mubr.bf16.gmra.mrb[60].mxu0 %v1116_v20 }
 0x34c   : > { %v2087_v60 = vpop.f32.mrb[32].mxu0 }
 0x34d   : > { %v1214_v61 = vadd.f32 %v2087_v60, %v3142_v58  ;;  %v1205_v62 = vpop.f32.mrb[33].mxu0 }
 0x34e   : > { %v1206_v53 = vadd.f32 %v3142_v58, %v1205_v62  ;;  %v2088_v9 = vpop.f32.mrb[34].mxu0 }
 0x34f   : > { %v1334_v29 = vmax.f32 %v1214_v61, 0.0  ;;  %v1217_v25 = vadd.f32 %v2088_v9, %v3142_v58  ;;  %v1208_v31 = vpop.f32.mrb[35].mxu0 }
 0x350   : > { %v1332_v32 = vmax.f32 %v1206_v53, 0.0  ;;  %v1209_v11 = vadd.f32 %v3142_v58, %v1208_v31 }
 0x351   : > { %v1335_v12 = vmax.f32 %v1217_v25, 0.0  ;;  %v1366_v55 = vadd.f32 %v1334_v29, %v2993_v50 }
 0x352   : > { %v1333_v33 = vmax.f32 %v1209_v11, 0.0  ;;  %v1364_v49 = vadd.f32 %v1332_v32, %v2987_v38 }
 0x353   : > { %v1367_v56 = vadd.f32 %v1335_v12, %v2984_v37 }
 0x354   : > { %v1365_v59 = vadd.f32 %v1333_v33, %v2990_v41  ;;  %v2091_v43 = vpop.f32.mrb[36].mxu0 }
 0x355   : > { %v1414_v63 = vpack.c.bf16 %v1367_v56, %v1366_v55  ;;  %v1230_v19 = vadd.f32 %v2091_v43, %v3142_v58  ;;  %v1221_v39 = vpop.f32.mrb[37].mxu0 }
 0x356   : > { %v1222_v45 = vadd.f32 %v3142_v58, %v1221_v39  ;;  %v2092_v42 = vpop.f32.mrb[38].mxu0  ;;  %v1413_v44 = vpack.c.bf16 %v1365_v59, %v1364_v49 }
 0x357   : > { %v1338_v21 = vmax.f32 %v1230_v19, 0.0  ;;  %v1233_v22 = vadd.f32 %v2092_v42, %v3142_v58  ;;  %v1224_v48 = vpop.f32.mrb[39].mxu0 }
 0x358   : > { %v1336_v50 = vmax.f32 %v1222_v45, 0.0  ;;  %v1225_v37 = vadd.f32 %v3142_v58, %v1224_v48  ;;  %2133 = vmatprep.mubr.bf16.mxu1 %v1413_v44 }
 0x359   : > { %v1339_v38 = vmax.f32 %v1233_v22, 0.0  ;;  %2134 = vmatmul.mubr.bf16.vlgmr.msra.gmra.mrb[32].mxu1 %v1414_v63  ;;  %v1370_v1 = vadd.f32 %v1338_v21, %v3013_v15 }
 0x35a   : > { %v1337_v41 = vmax.f32 %v1225_v37, 0.0  ;;  %v1368_v16 = vadd.f32 %v1336_v50, %v3007_v40 }
 0x35b   : > { %v1371_v2 = vadd.f32 %v1339_v38, %v3004_v8 }
 0x35c   : > { %v1369_v20 = vadd.f32 %v1337_v41, %v3010_v10  ;;  %v2095_v24 = vpop.f32.mrb[40].mxu0 }
 0x35d   : > { %v1246_v60 = vadd.f32 %v2095_v24, %v3142_v58  ;;  %v1237_v61 = vpop.f32.mrb[41].mxu0  ;;  %v1416_v62 = vpack.c.bf16 %v1371_v2, %v1370_v1 }
 0x35e   : > { %v1238_v53 = vadd.f32 %v3142_v58, %v1237_v61  ;;  %v2096_v9 = vpop.f32.mrb[42].mxu0  ;;  %v1415_v29 = vpack.c.bf16 %v1369_v20, %v1368_v16 }
 0x35f   : > { %v1342_v25 = vmax.f32 %v1246_v60, 0.0  ;;  %v1249_v31 = vadd.f32 %v2096_v9, %v3142_v58  ;;  %v1240_v32 = vpop.f32.mrb[43].mxu0 }
 0x360   : > { %v1340_v15 = vmax.f32 %v1238_v53, 0.0  ;;  %v1241_v8 = vadd.f32 %v3142_v58, %v1240_v32  ;;  %2137 = vmatprep.mubr.bf16.mxu1 %v1415_v29 }
 0x361   : > { %v1343_v40 = vmax.f32 %v1249_v31, 0.0  ;;  %2138 = vmatmul.mubr.bf16.gmra.mrb[36].mxu1 %v1416_v62  ;;  %v1374_v11 = vadd.f32 %v1342_v25, %v3033_v51 }
 0x362   : > { %v1341_v10 = vmax.f32 %v1241_v8, 0.0  ;;  %v1372_v33 = vadd.f32 %v1340_v15, %v3027_v35 }
 0x363   : > { %v1375_v12 = vadd.f32 %v1343_v40, %v3024_v34 }
 0x364   : > { %v1373_v55 = vadd.f32 %v1341_v10, %v3030_v36  ;;  %v2099_v56 = vpop.f32.mrb[44].mxu0 }
 0x365   : > { %v1262_v49 = vadd.f32 %v2099_v56, %v3142_v58  ;;  %v1253_v59 = vpop.f32.mrb[45].mxu0  ;;  %v1418_v43 = vpack.c.bf16 %v1375_v12, %v1374_v11 }
 0x366   : > { %v1254_v63 = vadd.f32 %v3142_v58, %v1253_v59  ;;  %v2100_v19 = vpop.f32.mrb[46].mxu0  ;;  %v1417_v39 = vpack.c.bf16 %v1373_v55, %v1372_v33 }
 0x367   : > { %v1346_v45 = vmax.f32 %v1262_v49, 0.0  ;;  %v1265_v42 = vadd.f32 %v2100_v19, %v3142_v58  ;;  %v1256_v44 = vpop.f32.mrb[47].mxu0 }
 0x368   : > { %v1344_v51 = vmax.f32 %v1254_v63, 0.0  ;;  %v1257_v34 = vadd.f32 %v3142_v58, %v1256_v44  ;;  %2141 = vmatprep.mubr.bf16.mxu1 %v1417_v39 }
 0x369   : > { %v1347_v35 = vmax.f32 %v1265_v42, 0.0  ;;  %2142 = vmatmul.mubr.bf16.gmra.mrb[40].mxu1 %v1418_v43  ;;  %v1378_v21 = vadd.f32 %v1346_v45, %v3053_v17 }
 0x36a   : > { %v1345_v36 = vmax.f32 %v1257_v34, 0.0  ;;  %v1376_v48 = vadd.f32 %v1344_v51, %v3047_v6 }
 0x36b   : > { %v1379_v22 = vadd.f32 %v1347_v35, %v3044_v47 }
 0x36c   : > { %v1377_v50 = vadd.f32 %v1345_v36, %v3050_v7  ;;  %v2103_v37 = vpop.f32.mrb[48].mxu0 }
 0x36d   : > { %v1278_v38 = vadd.f32 %v2103_v37, %v3142_v58  ;;  %v1269_v41 = vpop.f32.mrb[49].mxu0  ;;  %v1420_v1 = vpack.c.bf16 %v1379_v22, %v1378_v21 }
 0x36e   : > { %v1270_v2 = vadd.f32 %v3142_v58, %v1269_v41  ;;  %v2104_v16 = vpop.f32.mrb[50].mxu0  ;;  %v1419_v20 = vpack.c.bf16 %v1377_v50, %v1376_v48 }
 0x36f   : > { %v1350_v24 = vmax.f32 %v1278_v38, 0.0  ;;  %v1281_v60 = vadd.f32 %v2104_v16, %v3142_v58  ;;  %v1272_v61 = vpop.f32.mrb[51].mxu0 }
 0x370   : > { %v1348_v17 = vmax.f32 %v1270_v2, 0.0  ;;  %v1273_v47 = vadd.f32 %v3142_v58, %v1272_v61  ;;  %2145 = vmatprep.mubr.bf16.mxu1 %v1419_v20 }
 0x371   : > { %v1351_v6 = vmax.f32 %v1281_v60, 0.0  ;;  %2146 = vmatmul.mubr.bf16.gmra.mrb[44].mxu1 %v1420_v1  ;;  %v1382_v62 = vadd.f32 %v1350_v24, %v3073_v52 }
 0x372   : > { %v1349_v7 = vmax.f32 %v1273_v47, 0.0  ;;  %v1380_v9 = vadd.f32 %v1348_v17, %v3067_v28 }
 0x373   : > { %v1383_v53 = vadd.f32 %v1351_v6, %v3064_v57 }
 0x374   : > { %v1381_v29 = vadd.f32 %v1349_v7, %v3070_v30  ;;  %v2107_v25 = vpop.f32.mrb[52].mxu0 }
 0x375   : > { %v1294_v31 = vadd.f32 %v2107_v25, %v3142_v58  ;;  %v1285_v32 = vpop.f32.mrb[53].mxu0  ;;  %v1422_v15 = vpack.c.bf16 %v1383_v53, %v1382_v62 }
 0x376   : > { %v1286_v8 = vadd.f32 %v3142_v58, %v1285_v32  ;;  %v2108_v40 = vpop.f32.mrb[54].mxu0  ;;  %v1421_v10 = vpack.c.bf16 %v1381_v29, %v1380_v9 }
 0x377   : > { %v1354_v11 = vmax.f32 %v1294_v31, 0.0  ;;  %v1297_v12 = vadd.f32 %v2108_v40, %v3142_v58  ;;  %v1288_v33 = vpop.f32.mrb[55].mxu0 }
 0x378   : > { %v1352_v52 = vmax.f32 %v1286_v8, 0.0  ;;  %v1289_v57 = vadd.f32 %v3142_v58, %v1288_v33  ;;  %2149 = vmatprep.mubr.bf16.mxu1 %v1421_v10 }
 0x379   : > { %v1355_v28 = vmax.f32 %v1297_v12, 0.0  ;;  %2150 = vmatmul.mubr.bf16.gmra.mrb[48].mxu1 %v1422_v15  ;;  %v1386_v55 = vadd.f32 %v1354_v11, %v3093_v18 }
 0x37a   : > { %v1353_v30 = vmax.f32 %v1289_v57, 0.0  ;;  %v1384_v49 = vadd.f32 %v1352_v52, %v3087_v4 }
 0x37b   : > { %v1387_v56 = vadd.f32 %v1355_v28, %v3084_v3 }
 0x37c   : > { %v1385_v59 = vadd.f32 %v1353_v30, %v3090_v5  ;;  %v2111_v43 = vpop.f32.mrb[56].mxu0 }
 0x37d   : > { %v1310_v63 = vadd.f32 %v2111_v43, %v3142_v58  ;;  %v1301_v19 = vpop.f32.mrb[57].mxu0  ;;  %v1424_v39 = vpack.c.bf16 %v1387_v56, %v1386_v55 }
 0x37e   : > { %v1302_v45 = vadd.f32 %v3142_v58, %v1301_v19  ;;  %v2112_v42 = vpop.f32.mrb[58].mxu0  ;;  %v1423_v44 = vpack.c.bf16 %v1385_v59, %v1384_v49 }
 0x37f   : > { %v1358_v51 = vmax.f32 %v1310_v63, 0.0  ;;  %v1313_v34 = vadd.f32 %v2112_v42, %v3142_v58  ;;  %v1304_v35 = vpop.f32.mrb[59].mxu0 }
 0x380   : > { %v1356_v18 = vmax.f32 %v1302_v45, 0.0  ;;  %v1305_v3 = vadd.f32 %v3142_v58, %v1304_v35  ;;  %2153 = vmatprep.mubr.bf16.mxu1 %v1423_v44 }
 0x381   : > { %v1359_v4 = vmax.f32 %v1313_v34, 0.0  ;;  %2154 = vmatmul.mubr.bf16.gmra.mrb[52].mxu1 %v1424_v39  ;;  %v1390_v36 = vadd.f32 %v1358_v51, %v3113_v54 }
 0x382   : > { %v1357_v5 = vmax.f32 %v1305_v3, 0.0  ;;  %v1388_v22 = vadd.f32 %v1356_v18, %v3107_v26 }
 0x383   : > { %v1391_v21 = vadd.f32 %v1359_v4, %v3104_v13 }
 0x384   : > { %v1389_v48 = vadd.f32 %v1357_v5, %v3110_v27  ;;  %v2115_v50 = vpop.f32.mrb[60].mxu0 }
 0x385   : > { %v1326_v37 = vadd.f32 %v2115_v50, %v3142_v58  ;;  %v1317_v38 = vpop.f32.mrb[61].mxu0  ;;  %v1426_v41 = vpack.c.bf16 %v1391_v21, %v1390_v36 }
 0x386   : > { %v1318_v1 = vadd.f32 %v3142_v58, %v1317_v38  ;;  %v2116_v2 = vpop.f32.mrb[62].mxu0  ;;  %v1425_v16 = vpack.c.bf16 %v1389_v48, %v1388_v22 }
 0x387   : > { %v1362_v20 = vmax.f32 %v1326_v37, 0.0  ;;  %v1329_v24 = vadd.f32 %v2116_v2, %v3142_v58  ;;  %v1320_v54 = vpop.f32.mrb[63].mxu0 }
 0x388   : > { %v1360_v60 = vmax.f32 %v1318_v1, 0.0  ;;  %v1321_v13 = vadd.f32 %v3142_v58, %v1320_v54  ;;  %2157 = vmatprep.mubr.bf16.mxu1 %v1425_v16  ;;  %v3212_v58 = vld [vmem:[%s3338_s8] ss:$0 sm:$0xff] }
 0x389   : > { %v1363_v26 = vmax.f32 %v1329_v24, 0.0  ;;  %2158 = vmatmul.mubr.bf16.gmra.mrb[56].mxu1 %v1426_v41  ;;  %v1394_v61 = vadd.f32 %v1362_v20, %v3133_v14 }
 0x38a   : > { %v1361_v27 = vmax.f32 %v1321_v13, 0.0  ;;  %v1392_v47 = vadd.f32 %v1360_v60, %v3127_v0 }
 0x38b   : > { %v1395_v17 = vadd.f32 %v1363_v26, %v3124_v23 }
 0x38c   : > { %v1393_v6 = vadd.f32 %v1361_v27, %v3130_v46 }
 0x38d   : > { %v1428_v7 = vpack.c.bf16 %v1395_v17, %v1394_v61 }
 0x38e   : > { %v1427_v62 = vpack.c.bf16 %v1393_v6, %v1392_v47 }
 0x390   : > { %2161 = vmatprep.mubr.bf16.mxu1 %v1427_v62 }
 0x391   : > { %2162 = vmatmul.mubr.bf16.gmra.mrb[60].mxu1 %v1428_v7 }
 0x42c   : > { %v2135_v53 = vpop.f32.mrb[32].mxu1 }
 0x42d   : > { %v1526_v9 = vadd.f32 %v2135_v53, %v3212_v58  ;;  %v1517_v14 = vpop.f32.mrb[33].mxu1 }
 0x42e   : > { %v1518_v23 = vadd.f32 %v3212_v58, %v1517_v14  ;;  %v2136_v29 = vpop.f32.mrb[34].mxu1 }
 0x42f   : > { %1646 = vst [vmem:[%s3216_s16 + $0x10] sm:$0xff] %v1526_v9  ;;  %v1529_v0 = vadd.f32 %v2136_v29, %v3212_v58  ;;  %v1520_v46 = vpop.f32.mrb[35].mxu1 }
 0x430   : > { %1644 = vst [vmem:[%s3216_s16] sm:$0xff] %v1518_v23  ;;  %v1521_v25 = vadd.f32 %v3212_v58, %v1520_v46 }
 0x431   : > { %1647 = vst [vmem:[%s3216_s16 + $0x18] sm:$0xff] %v1529_v0 }
 0x432   : > { %1645 = vst [vmem:[%s3216_s16 + $0x8] sm:$0xff] %v1521_v25 }
 0x434   : > { %v2139_v31 = vpop.f32.mrb[36].mxu1 }
 0x435   : > { %v1542_v32 = vadd.f32 %v2139_v31, %v3212_v58  ;;  %v1533_v15 = vpop.f32.mrb[37].mxu1 }
 0x436   : > { %v1534_v8 = vadd.f32 %v3212_v58, %v1533_v15  ;;  %v2140_v40 = vpop.f32.mrb[38].mxu1 }
 0x437   : > { %1650 = vst [vmem:[%s3216_s16 + $0x30] sm:$0xff] %v1542_v32  ;;  %v1545_v10 = vadd.f32 %v2140_v40, %v3212_v58  ;;  %v1536_v11 = vpop.f32.mrb[39].mxu1 }
 0x438   : > { %1648 = vst [vmem:[%s3216_s16 + $0x20] sm:$0xff] %v1534_v8  ;;  %v1537_v12 = vadd.f32 %v3212_v58, %v1536_v11 }
 0x439   : > { %1651 = vst [vmem:[%s3216_s16 + $0x38] sm:$0xff] %v1545_v10 }
 0x43a   : > { %1649 = vst [vmem:[%s3216_s16 + $0x28] sm:$0xff] %v1537_v12 }
 0x43c   : > { %v2143_v33 = vpop.f32.mrb[40].mxu1 }
 0x43d   : > { %v1558_v52 = vadd.f32 %v2143_v33, %v3212_v58  ;;  %v1549_v57 = vpop.f32.mrb[41].mxu1 }
 0x43e   : > { %v1550_v28 = vadd.f32 %v3212_v58, %v1549_v57  ;;  %v2144_v30 = vpop.f32.mrb[42].mxu1 }
 0x43f   : > { %1654 = vst [vmem:[%s3216_s16 + $0x50] sm:$0xff] %v1558_v52  ;;  %v1561_v55 = vadd.f32 %v2144_v30, %v3212_v58  ;;  %v1552_v56 = vpop.f32.mrb[43].mxu1 }
 0x440   : > { %1652 = vst [vmem:[%s3216_s16 + $0x40] sm:$0xff] %v1550_v28  ;;  %v1553_v49 = vadd.f32 %v3212_v58, %v1552_v56 }
 0x441   : > { %1655 = vst [vmem:[%s3216_s16 + $0x58] sm:$0xff] %v1561_v55 }
 0x442   : > { %1653 = vst [vmem:[%s3216_s16 + $0x48] sm:$0xff] %v1553_v49 }
 0x444   : > { %v2147_v59 = vpop.f32.mrb[44].mxu1 }
 0x445   : > { %v1574_v43 = vadd.f32 %v2147_v59, %v3212_v58  ;;  %v1565_v63 = vpop.f32.mrb[45].mxu1 }
 0x446   : > { %v1566_v19 = vadd.f32 %v3212_v58, %v1565_v63  ;;  %v2148_v39 = vpop.f32.mrb[46].mxu1 }
 0x447   : > { %1658 = vst [vmem:[%s3216_s16 + $0x70] sm:$0xff] %v1574_v43  ;;  %v1577_v45 = vadd.f32 %v2148_v39, %v3212_v58  ;;  %v1568_v42 = vpop.f32.mrb[47].mxu1 }
 0x448   : > { %1656 = vst [vmem:[%s3216_s16 + $0x60] sm:$0xff] %v1566_v19  ;;  %v1569_v44 = vadd.f32 %v3212_v58, %v1568_v42 }
 0x449   : > { %1659 = vst [vmem:[%s3216_s16 + $0x78] sm:$0xff] %v1577_v45 }
 0x44a   : > { %1657 = vst [vmem:[%s3216_s16 + $0x68] sm:$0xff] %v1569_v44 }
 0x44c   : > { %v2151_v51 = vpop.f32.mrb[48].mxu1 }
 0x44d   : > { %v1590_v34 = vadd.f32 %v2151_v51, %v3212_v58  ;;  %v1581_v35 = vpop.f32.mrb[49].mxu1 }
 0x44e   : > { %v1582_v18 = vadd.f32 %v3212_v58, %v1581_v35  ;;  %v2152_v3 = vpop.f32.mrb[50].mxu1 }
 0x44f   : > { %1662 = vst [vmem:[%s3216_s16 + $0x90] sm:$0xff] %v1590_v34  ;;  %v1593_v4 = vadd.f32 %v2152_v3, %v3212_v58  ;;  %v1584_v5 = vpop.f32.mrb[51].mxu1 }
 0x450   : > { %1660 = vst [vmem:[%s3216_s16 + $0x80] sm:$0xff] %v1582_v18  ;;  %v1585_v36 = vadd.f32 %v3212_v58, %v1584_v5 }
 0x451   : > { %1663 = vst [vmem:[%s3216_s16 + $0x98] sm:$0xff] %v1593_v4 }
 0x452   : > { %1661 = vst [vmem:[%s3216_s16 + $0x88] sm:$0xff] %v1585_v36 }
 0x454   : > { %v2155_v21 = vpop.f32.mrb[52].mxu1 }
 0x455   : > { %v1606_v22 = vadd.f32 %v2155_v21, %v3212_v58  ;;  %v1597_v48 = vpop.f32.mrb[53].mxu1 }
 0x456   : > { %v1598_v50 = vadd.f32 %v3212_v58, %v1597_v48  ;;  %v2156_v37 = vpop.f32.mrb[54].mxu1 }
 0x457   : > { %1666 = vst [vmem:[%s3216_s16 + $0xb0] sm:$0xff] %v1606_v22  ;;  %v1609_v38 = vadd.f32 %v2156_v37, %v3212_v58  ;;  %v1600_v41 = vpop.f32.mrb[55].mxu1 }
 0x458   : > { %1664 = vst [vmem:[%s3216_s16 + $0xa0] sm:$0xff] %v1598_v50  ;;  %v1601_v1 = vadd.f32 %v3212_v58, %v1600_v41 }
 0x459   : > { %1667 = vst [vmem:[%s3216_s16 + $0xb8] sm:$0xff] %v1609_v38 }
 0x45a   : > { %1665 = vst [vmem:[%s3216_s16 + $0xa8] sm:$0xff] %v1601_v1 }
 0x45c   : > { %v2159_v2 = vpop.f32.mrb[56].mxu1 }
 0x45d   : > { %v1622_v16 = vadd.f32 %v2159_v2, %v3212_v58  ;;  %v1613_v20 = vpop.f32.mrb[57].mxu1 }
 0x45e   : > { %v1614_v24 = vadd.f32 %v3212_v58, %v1613_v20  ;;  %v2160_v54 = vpop.f32.mrb[58].mxu1 }
 0x45f   : > { %1670 = vst [vmem:[%s3216_s16 + $0xd0] sm:$0xff] %v1622_v16  ;;  %v1625_v60 = vadd.f32 %v2160_v54, %v3212_v58  ;;  %v1616_v13 = vpop.f32.mrb[59].mxu1 }
 0x460   : > { %1668 = vst [vmem:[%s3216_s16 + $0xc0] sm:$0xff] %v1614_v24  ;;  %v1617_v26 = vadd.f32 %v3212_v58, %v1616_v13 }
 0x461   : > { %1671 = vst [vmem:[%s3216_s16 + $0xd8] sm:$0xff] %v1625_v60 }
 0x462   : > { %1669 = vst [vmem:[%s3216_s16 + $0xc8] sm:$0xff] %v1617_v26 }
 0x464   : > { %v2163_v27 = vpop.f32.mrb[60].mxu1 }
 0x465   : > { %v1638_v61 = vadd.f32 %v2163_v27, %v3212_v58  ;;  %v1629_v17 = vpop.f32.mrb[61].mxu1 }
 0x466   : > { %v1630_v47 = vadd.f32 %v3212_v58, %v1629_v17  ;;  %v2164_v6 = vpop.f32.mrb[62].mxu1 }
 0x467   : > { %1674 = vst [vmem:[%s3216_s16 + $0xf0] sm:$0xff] %v1638_v61  ;;  %v1641_v7 = vadd.f32 %v2164_v6, %v3212_v58  ;;  %v1632_v62 = vpop.f32.mrb[63].mxu1 }
 0x468   : > { %1672 = vst [vmem:[%s3216_s16 + $0xe0] sm:$0xff] %v1630_v47  ;;  %v1633_v53 = vadd.f32 %v3212_v58, %v1632_v62 }
 0x469   : > { %1675 = vst [vmem:[%s3216_s16 + $0xf8] sm:$0xff] %v1641_v7 }
 0x46a   : > { %1673 = vst [vmem:[%s3216_s16 + $0xe8] sm:$0xff] %v1633_v53 }
 0x46b   : > { %2459 = shalt.err (!%p2456_p12)
}
 0x46c   : > { %s2460_s9 = scalar_lea.hbm %s3281_s17, 4096  ;;  %s2464_s16 = scalar_lea.hbm %s3363_s15, 16384 }
 0x46d   : > { %p2461_p9 = scmp.ne.s32.totalorder %s3281_s17, %s2460_s9  ;;  %p2465_p4 = scmp.lt.u32.totalorder %s3281_s17, %s3363_s15 }
 0x46e   : > { %p2466_p8 = scmp.lt.u32.totalorder %s2464_s16, %s2460_s9  ;;  %p2468_p3 = scmp.lt.u32.totalorder %s2460_s9, %s3281_s17 }
 0x46f   : > { %p2462_p13 = pnand %p2461_p9, %p2752_p0 }
 0x470   : > { %p2467_p6 = por %p2466_p8, %p2465_p4 }
 0x471   : > { %p2463_p10 = pneg %p2462_p13 }
 0x472   : > { %p2469_p5 = por %p2468_p3, %p2467_p6 }
 0x474   : > { %p2470_p7 = pnand %p2469_p5, %p2463_p10 }
 0x476   : > { %2473 = shalt.err (!%p2470_p7)
}
 0x477   : > { %s2530_s29 = smov 128   ;;  %s2531_s25 = smov 8  }
 0x478   : > { %2183 = dma.vmem_to_hbm [thread:$0]  (%p2752_p0), %s3283_s21, 4096, %s3281_s17, %s1677_s13, %s2530_s29, %s2530_s29, %s2531_s25  }
 0x479 PF: > { %s3364_s26 = sld [smem:[#allocation16_spill]]  ;;  %s3365_s19 = sld [smem:[#allocation17_spill]] }
 0x47a   : > { %p2215_p11 = scmp.ge.s32.totalorder %s2520_s12, 2 }
 0x47f   : > { %s1705_s22 = sand.u32 1, %s3364_s26   ;;  %p3366_p1 = scmp.ne.s32.totalorder %s3365_s19, 0 }
 0x480   : > { %s1706_s9 = scalar_lea.sflag [#allocation4], %s1705_s22 }
 0x481   : > { %p2203_p2 = pnand %p2215_p11, %p3366_p1 }
 0x483   : > { %2503 = dma.done.wait (!%p2203_p2), %s1706_s9, 4096  }
 0x484   : > { %2505 = vsyncadd (!%p2203_p2), %s1706_s9, 4294963200  ;;  %p24_p12 = scmp.ge.s32.totalorder %s2742_s14, 6   ;;  %s3367_s30 = smov %s2512_s10 }
 0x485   : > { %s3368_s10 = smov %s2516_s11  ;;  %s3369_s11 = smov %s2758_s28 }
 0x486   : > { %s3370_s12 = smov %s2742_s14  ;;  %26 = sbr.rel (!%p24_p12) target bundleno = 9 (0x9), region = 117 }
 0x48d   :  { %1711 = vsyncpa [#allocation3], 1 }
 0x48e   :  { %1713 = vsyncpa [#allocation3 + $0x1], 1 }
 0x48f   :  { %1714 = vsyncpa [#allocation6], 1 }
 0x490   :  { %1715 = vsyncpa [#allocation9], 1 }
 0x491   :  { %1716 = vsyncpa [#allocation4], 1 }
 0x492   :  { %1718 = vsyncpa [#allocation4 + $0x1], 1 }

</bundles_post_ra>
